<compile_context>
chip_gen: v6e
topology: v6e:2x2x1
jax: 0.10.0
libtpu: 0.0.40
codegen_flags: <defaults>
</compile_context>

<pallas_src>
import functools

import jax
import jax.numpy as jnp
from jax.experimental import pallas as pl
from jax.experimental.pallas import tpu as pltpu


def _round_up(n: int, m: int) -> int:
    return ((n + m - 1) // m) * m


def sign_kernel(x_ref, w1_ref, b1_ref, w2_ref, b2_ref, o_ref, *, matmul_dtype):
    # Cast x in-kernel (hidden under the input DMA); f32 cast is a no-op.
    x = x_ref[...].astype(matmul_dtype)
    # theta: Linear(D_in -> D_hid).  MXU matmul with f32 accumulation.
    h = jnp.dot(x, w1_ref[...], preferred_element_type=jnp.float32)
    h = h + b1_ref[...]                       # (1, D_hid) broadcast, f32 on the VPU
    z = jnp.maximum(h, 0.0)                   # ReLU in f32
    z = z.astype(matmul_dtype)                # explicit precision choice for 2nd matmul LHS
    # omega: Linear(D_hid -> D_out).  N may be narrow (masked MXU cols); the MXU
    # is nowhere near saturation at these sizes, so no shape tuning needed.
    y = jnp.dot(z, w2_ref[...], preferred_element_type=jnp.float32)
    o_ref[...] = (y + b2_ref[...]).astype(o_ref.dtype)


def prepare_sign_params(w1, b1, w2, b2, *, matmul_dtype=jnp.float32):
    """One-time weight prep (hoisted out of the per-call path).

    Weights are cast to the matmul operand dtype (bf16 recommended on all TPU
    generations; accumulation stays f32 in-kernel).  Biases stay f32.
    """
    D_in, D_hid = w1.shape
    D_out = w2.shape[1]
    return (w1.astype(matmul_dtype),
            jnp.asarray(b1).reshape(1, D_hid).astype(jnp.float32),
            w2.astype(matmul_dtype),
            jnp.asarray(b2).reshape(1, D_out).astype(jnp.float32))


def sign_forward(x, params, *, tile_b=None):
    """y = relu(x @ w1 + b1) @ w2 + b2 (weights stored transposed vs nn.Linear).

    `params` comes from prepare_sign_params(); the matmul dtype is inferred from
    the prepared weight dtype.  Output is (B, D_out) in x.dtype.
    """
    w1, b1, w2, b2 = params
    B, D_in = x.shape
    D_hid = w1.shape[1]
    D_out = w2.shape[1]
    matmul_dtype = w1.dtype
    out_dtype = x.dtype

    # --- batch tiling: no padding; Pallas masks the partial last block --------
    if tile_b is None:
        # Default: exactly 2 grid steps -> one per v7x TensorCore; on single-TC
        # v5e/v6e two large steps still amortize per-step overhead.
        tile_b = _round_up(pl.cdiv(B, 2), 8)
    tile_b = max(8, _round_up(min(tile_b, _round_up(B, 8)), 8))
    grid = (pl.cdiv(B, tile_b),)

    kernel = functools.partial(sign_kernel, matmul_dtype=matmul_dtype)

    out = pl.pallas_call(
        kernel,
        out_shape=jax.ShapeDtypeStruct((B, D_out), out_dtype),
        grid_spec=pltpu.PrefetchScalarGridSpec(
            num_scalar_prefetch=0,
            grid=grid,
            in_specs=[
                pl.BlockSpec((tile_b, D_in), lambda i: (i, 0)),   # x batch tile
                pl.BlockSpec((D_in, D_hid), lambda i: (0, 0)),    # w1 (resident)
                pl.BlockSpec((1, D_hid), lambda i: (0, 0)),       # b1 (resident)
                pl.BlockSpec((D_hid, D_out), lambda i: (0, 0)),   # w2 (resident)
                pl.BlockSpec((1, D_out), lambda i: (0, 0)),       # b2 (resident)
            ],
            out_specs=pl.BlockSpec((tile_b, D_out), lambda i: (i, 0)),
        ),
        compiler_params=pltpu.CompilerParams(
            dimension_semantics=("parallel",)),
    )(x, w1, b1, w2, b2)

    return out


if __name__ == "__main__":
    # Shapes consistent with SIGN(in_size, out_size, r, hidden_size):
    in_size, out_size, r, hidden_size = 16, 8, 3, 32
    D_in = in_size * (r + 1)        # 64
    D_hid = hidden_size * (r + 1)   # 128
    D_out = out_size                # 8
    B = 1000                        # node batch; NOT a multiple of the tile on purpose
                                    # (exercises the masked partial last block)

    key = jax.random.PRNGKey(0)
    kx, kw1, kb1, kw2, kb2 = jax.random.split(key, 5)

    x = jax.random.normal(kx, (B, D_in), dtype=jnp.float32)
    # Deterministic synthetic parameters (uniform init akin to nn.Linear defaults).
    w1 = jax.random.uniform(kw1, (D_in, D_hid), dtype=jnp.float32,
                            minval=-1.0, maxval=1.0) / jnp.sqrt(D_in)
    b1 = jax.random.uniform(kb1, (1, D_hid), dtype=jnp.float32,
                            minval=-1.0, maxval=1.0) / jnp.sqrt(D_in)
    w2 = jax.random.uniform(kw2, (D_hid, D_out), dtype=jnp.float32,
                            minval=-1.0, maxval=1.0) / jnp.sqrt(D_hid)
    b2 = jax.random.uniform(kb2, (1, D_out), dtype=jnp.float32,
                            minval=-1.0, maxval=1.0) / jnp.sqrt(D_hid)

    # Pure-JAX reference (same semantics as the PyTorch forward).
    ref = jnp.maximum(x @ w1 + b1, 0.0) @ w2 + b2

    # f32 path: tight correctness check (auto tile_b -> 2 steps, last one partial).
    params_f32 = prepare_sign_params(w1, b1, w2, b2, matmul_dtype=jnp.float32)
    out = jax.block_until_ready(sign_forward(x, params_f32))
    assert out.shape == (B, D_out)
    assert jnp.allclose(out, ref, atol=1e-5, rtol=1e-5)

    # bf16-matmul path (safe on v5e/v6e/v7x: VPU work and accumulation stay f32).
    # Weights and the in-kernel x/z casts are bf16, so ~1e-2 relative error vs the
    # f32 reference is expected -> loose tolerance is intentional.
    params_bf16 = prepare_sign_params(w1, b1, w2, b2, matmul_dtype=jnp.bfloat16)
    out_bf16 = jax.block_until_ready(sign_forward(x, params_bf16))
    assert out_bf16.shape == (B, D_out)
    assert jnp.allclose(out_bf16, ref, atol=1e-1, rtol=1e-1)

    # Explicit single-tile run (1 grid step, e.g. for single-TC v5e/v6e).
    out_one = jax.block_until_ready(sign_forward(x, params_f32, tile_b=1000))
    assert jnp.allclose(out_one, ref, atol=1e-5, rtol=1e-5)

    print("KERNEL_OK")
</pallas_src>

<mosaic_0001>
module attributes {stable_mosaic.version = 11 : i64} {
  func.func @sign_kernel(%arg0: i32, %arg1: memref<504x64xf32, #tpu.memory_space<vmem>>, %arg2: memref<64x128xf32, #tpu.memory_space<vmem>>, %arg3: memref<1x128xf32, #tpu.memory_space<vmem>>, %arg4: memref<128x8xf32, #tpu.memory_space<vmem>>, %arg5: memref<1x8xf32, #tpu.memory_space<vmem>>, %arg6: memref<504x8xf32, #tpu.memory_space<vmem>>) attributes {dimension_semantics = [#tpu.dimension_semantics<parallel>], iteration_bounds = array<i64: 2>, scalar_prefetch = 0 : i64, scratch_operands = 0 : i64, tpu.core_type = #tpu.core_type<tc>, window_params = [{transform_indices = @transform_0, window_bounds = array<i64: 504, 64>}, {pipeline_mode = #tpu.pipeline_mode<synchronous>, transform_indices = @transform_1, window_bounds = array<i64: 64, 128>}, {pipeline_mode = #tpu.pipeline_mode<synchronous>, transform_indices = @transform_2, window_bounds = array<i64: 1, 128>}, {pipeline_mode = #tpu.pipeline_mode<synchronous>, transform_indices = @transform_3, window_bounds = array<i64: 128, 8>}, {pipeline_mode = #tpu.pipeline_mode<synchronous>, transform_indices = @transform_4, window_bounds = array<i64: 1, 8>}, {transform_indices = @transform_5, window_bounds = array<i64: 504, 8>}]} {
    %c0 = arith.constant 0 : index
    %c0_0 = arith.constant 0 : index
    %0 = vector.load %arg1[%c0, %c0_0] : memref<504x64xf32, #tpu.memory_space<vmem>>, vector<504x64xf32>
    %c0_1 = arith.constant 0 : index
    %c0_2 = arith.constant 0 : index
    %1 = vector.load %arg2[%c0_1, %c0_2] : memref<64x128xf32, #tpu.memory_space<vmem>>, vector<64x128xf32>
    %cst = arith.constant dense<0.000000e+00> : vector<504x128xf32>
    %2 = tpu.matmul %0, %1, %cst {dimension_numbers = #tpu.dot_dimension_numbers<[1], [0], [0], [1], [0, 0, 1, 1], [], []>} : vector<504x64xf32>, vector<64x128xf32>, vector<504x128xf32> -> vector<504x128xf32>
    %c0_3 = arith.constant 0 : index
    %c0_4 = arith.constant 0 : index
    %3 = vector.load %arg3[%c0_3, %c0_4] : memref<1x128xf32, #tpu.memory_space<vmem>>, vector<1x128xf32>
    %4 = vector.broadcast %3 : vector<1x128xf32> to vector<504x128xf32>
    %5 = arith.addf %2, %4 : vector<504x128xf32>
    %cst_5 = arith.constant 0.000000e+00 : f32
    %6 = vector.broadcast %cst_5 : f32 to vector<504x128xf32>
    %7 = arith.maximumf %5, %6 : vector<504x128xf32>
    %c0_6 = arith.constant 0 : index
    %c0_7 = arith.constant 0 : index
    %8 = vector.load %arg4[%c0_6, %c0_7] : memref<128x8xf32, #tpu.memory_space<vmem>>, vector<128x8xf32>
    %cst_8 = arith.constant dense<0.000000e+00> : vector<504x8xf32>
    %9 = tpu.matmul %7, %8, %cst_8 {dimension_numbers = #tpu.dot_dimension_numbers<[1], [0], [0], [1], [0, 0, 1, 1], [], []>} : vector<504x128xf32>, vector<128x8xf32>, vector<504x8xf32> -> vector<504x8xf32>
    %c0_9 = arith.constant 0 : index
    %c0_10 = arith.constant 0 : index
    %10 = vector.load %arg5[%c0_9, %c0_10] : memref<1x8xf32, #tpu.memory_space<vmem>>, vector<1x8xf32>
    %11 = vector.broadcast %10 : vector<1x8xf32> to vector<504x8xf32>
    %12 = arith.addf %9, %11 : vector<504x8xf32>
    %c0_11 = arith.constant 0 : index
    %c0_12 = arith.constant 0 : index
    %13 = vector.load %arg6[%c0_11, %c0_12] : memref<504x8xf32, #tpu.memory_space<vmem>>, vector<504x8xf32>
    tpu.vector_store %arg6[%c0_11, %c0_12], %12 {strides = array<i32>} : memref<504x8xf32, #tpu.memory_space<vmem>>, vector<504x8xf32>,
    return
  }
  func.func @transform_0(%arg0: i32) -> (i32, i32) {
    %c0_i32 = arith.constant 0 : i32
    %c0_i32_0 = arith.constant 0 : i32
    return %arg0, %c0_i32 : i32, i32
  }
  func.func @transform_1(%arg0: i32) -> (i32, i32) {
    %c0_i32 = arith.constant 0 : i32
    %c0_i32_0 = arith.constant 0 : i32
    %c0_i32_1 = arith.constant 0 : i32
    return %c0_i32, %c0_i32_0 : i32, i32
  }
  func.func @transform_2(%arg0: i32) -> (i32, i32) {
    %c0_i32 = arith.constant 0 : i32
    %c0_i32_0 = arith.constant 0 : i32
    %c0_i32_1 = arith.constant 0 : i32
    return %c0_i32, %c0_i32_0 : i32, i32
  }
  func.func @transform_3(%arg0: i32) -> (i32, i32) {
    %c0_i32 = arith.constant 0 : i32
    %c0_i32_0 = arith.constant 0 : i32
    %c0_i32_1 = arith.constant 0 : i32
    return %c0_i32, %c0_i32_0 : i32, i32
  }
  func.func @transform_4(%arg0: i32) -> (i32, i32) {
    %c0_i32 = arith.constant 0 : i32
    %c0_i32_0 = arith.constant 0 : i32
    %c0_i32_1 = arith.constant 0 : i32
    return %c0_i32, %c0_i32_0 : i32, i32
  }
  func.func @transform_5(%arg0: i32) -> (i32, i32) {
    %c0_i32 = arith.constant 0 : i32
    %c0_i32_0 = arith.constant 0 : i32
    return %arg0, %c0_i32 : i32, i32
  }
}

</mosaic_0001>

<bundles_post_ra>
// kernel: tpu_custom_call.1
= control target key start
LH: loop header
LB: loop body
LE: loop exit
PB: predicated region body
PF: predicated region fallthrough
CT: control target
= control target key end

     0   :  { %s2797_s18 = smov 0   ;;  %s2799_s19 = smov 0   ;;  %s3796_s0 = inlined_call_operand.vmem [shape: f32[1000,64], index: 0, kind: input, shape index: {}]   ;;  %s3797_s1 = inlined_call_operand.vmem [shape: f32[64,128], index: 1, kind: input, shape index: {}]   ;;  %s3798_s2 = inlined_call_operand.vmem [shape: f32[1,128], index: 2, kind: input, shape index: {}]   ;;  %s3799_s3 = inlined_call_operand.vmem [shape: f32[128,8], index: 3, kind: input, shape index: {}]   ;;  %s3800_s4 = inlined_call_operand.vmem [shape: f32[1,8], index: 4, kind: input, shape index: {}]   ;;  %s3801_s5 = inlined_call_operand.vmem [shape: f32[1000,8], index: 5, kind: output, shape index: {}]  }
   0x1   :  { %s2801_s20 = smov 0  }
   0x2 LB: > { %s2810_s21 = sadd.s32 4294967295, %s2731_s20   ;;  %s2812_s22 = sadd.s32 1, %s2731_s20   ;;  %s2731_s20 = sphi %s2801_s20, %s3810_s20   ;;  %s2727_s19 = sphi %s2799_s19, %s3809_s19   ;;  %s2723_s18 = sphi %s2797_s18, %s3808_s18  }
   0x3   : > { %s129_s23 = ssub.s32 %s2731_s20, %s2812_s22  ;;  %s132_s24 = sadd.s32 1, %s2727_s19 }
   0x4   : > { %p130_p0 = scmp.eq.s32.totalorder %s129_s23, 0  ;;  %p142_p1 = scmp.ne.s32.totalorder %s2727_s19, %s2723_s18 }
   0x5   : > { %p143_p2 = scmp.eq.s32.totalorder %s2810_s21, 1  ;;  %p1893_p3 = scmp.ge.s32.totalorder %s2731_s20, 1 }
   0x6   : > { %s2820_s25 = scalar_select %p130_p0, %s2727_s19, %s132_s24  }
   0x7   : > { %p2822_p4 = por %p143_p2, %p142_p1  ;;  %p196_p5 = scmp.lt.s32.totalorder %s2731_s20, 3 }
   0x9   : > { %p197_p6 = pnand %p1893_p3, %p196_p5 }
   0xa   : > { %s2830_s29 = smul.u32 (!%p197_p6), 63, %s2810_s21 }
   0xb   : > { %200 = sbr.rel (%p197_p6) target bundleno = 752 (0x2f0), region = 40 }
   0xc   : > { %p232_p7 = scmp.lt.s32.totalorder (!%p197_p6), %s2830_s29, 124 }
  0x10   : > { %v316_v0 = vld [vmem:[%s3797_s1 + $0x38] sm:$0xff]  ;;  %v2765_v1 = vmov 0.0   ;;  %v315_v2 = vld [vmem:[%s3797_s1 + $0x30] sm:$0xff]  ;;  %vm2766_vm0 = vmmov 0   ;;  %v314_v3 = vld [vmem:[%s3797_s1 + $0x28] sm:$0xff]  ;;  %s233_s9 = scalar_select %p232_p7, %s2830_s29, 124 }
  0x11   : > { %2123 = vmatprep.subr.mxu0 %v2765_v1  ;;  %2139 = vmatprep.mubr.msk.f32.mxu0 %vm2766_vm0, %v2765_v1  ;;  %v313_v4 = vld [vmem:[%s3797_s1 + $0x20] sm:$0xff]  ;;  %v312_v5 = vld [vmem:[%s3797_s1 + $0x18] sm:$0xff]  ;;  %v311_v6 = vld [vmem:[%s3797_s1 + $0x10] sm:$0xff]  ;;  %vm324_vm1 = vcmask 523264   ;;  %vm1360_vm2 = vcmask 64512   ;;  %s1972_s10 = smul.u32 (%p2822_p4), 504, %s2810_s21 }
  0x12   : > { %2124 = vmatpush3.msra.mxu0 %v316_v0  ;;  %2549 = vmatprep.subr.mxu1 %v2765_v1  ;;  %s1894_s14 = sshll.u32 %s233_s9, 3  ;;  %v310_v7 = vld [vmem:[%s3797_s1 + $0x8] sm:$0xff]  ;;  %v309_v8 = vld [vmem:[%s3797_s1] sm:$0xff]  ;;  %v972_v21 = vld [vmem:[%s3799_s3 + $0x78] sm:$0xff]  ;;  %s1432_s9 = ssub.s32 (%p2822_p4), 125, %s2830_s29 }
  0x13   : > { %2125 = vmatprep.subr.mxu0 %v2765_v1  ;;  %2366 = vmatprep.mubr.msk.f32.mxu1 %vm2766_vm0, %v2765_v1  ;;  %s2866_s27 = scalar_lea.vmem %s3796_s0, %s1894_s14  ;;  %v971_v23 = vld [vmem:[%s3799_s3 + $0x70] sm:$0xff]  ;;  %v970_v24 = vld [vmem:[%s3799_s3 + $0x68] sm:$0xff]  ;;  %v969_v26 = vld [vmem:[%s3799_s3 + $0x60] sm:$0xff]  ;;  %p1433_p8 = scmp.lt.s32.totalorder (%p2822_p4), %s1432_s9, 63 }
  0x14   : > { %2126 = vmatpush3.msra.mxu0 %v315_v2  ;;  %v246_v9 = vld [vmem:[%s2866_s27] sm:$0xff]  ;;  %v247_v10 = vld [vmem:[%s2866_s27 + $0x8] sm:$0xff]  ;;  %v248_v11 = vld [vmem:[%s2866_s27 + $0x10] sm:$0xff]  ;;  %2565 = vmatpush3.msra.mxu1 %v972_v21  ;;  %s3604_s13 = scalar_lea.vmem (%p2822_p4), %s3801_s5, %s1972_s10  }
  0x15   : > { %2127 = vmatprep.subr.mxu0 %v2765_v1  ;;  %v249_v12 = vld [vmem:[%s2866_s27 + $0x18] sm:$0xff]  ;;  %v250_v13 = vld [vmem:[%s2866_s27 + $0x20] sm:$0xff]  ;;  %v251_v14 = vld [vmem:[%s2866_s27 + $0x28] sm:$0xff]  ;;  %2550 = vmatprep.subr.mxu1 %v2765_v1 }
  0x16   : > { %2128 = vmatpush3.msra.mxu0 %v314_v3  ;;  %v252_v15 = vld [vmem:[%s2866_s27 + $0x30] sm:$0xff]  ;;  %v253_v16 = vld [vmem:[%s2866_s27 + $0x38] sm:$0xff]  ;;  %v254_v17 = vld [vmem:[%s2866_s27 + $0x40] sm:$0xff]  ;;  %2566 = vmatpush3.msra.mxu1 %v971_v23 }
  0x17   : > { %2129 = vmatprep.subr.mxu0 %v2765_v1  ;;  %v255_v18 = vld [vmem:[%s2866_s27 + $0x48] sm:$0xff]  ;;  %v256_v19 = vld [vmem:[%s2866_s27 + $0x50] sm:$0xff]  ;;  %v257_v20 = vld [vmem:[%s2866_s27 + $0x58] sm:$0xff]  ;;  %2551 = vmatprep.subr.mxu1 %v2765_v1 }
  0x18   : > { %2130 = vmatpush3.msra.mxu0 %v313_v4  ;;  %v258_v22 = vld [vmem:[%s2866_s27 + $0x60] sm:$0xff]  ;;  %v259_v25 = vld [vmem:[%s2866_s27 + $0x68] sm:$0xff]  ;;  %2567 = vmatpush3.msra.mxu1 %v970_v24  ;;  %v968_v27 = vld [vmem:[%s3799_s3 + $0x58] sm:$0xff] }
  0x19   : > { %2131 = vmatprep.subr.mxu0 %v2765_v1  ;;  %2552 = vmatprep.subr.mxu1 %v2765_v1  ;;  %v260_v28 = vld [vmem:[%s2866_s27 + $0x70] sm:$0xff]  ;;  %v966_v30 = vld [vmem:[%s3799_s3 + $0x48] sm:$0xff]  ;;  %v261_v31 = vld [vmem:[%s2866_s27 + $0x78] sm:$0xff] }
  0x1a   : > { %2132 = vmatpush3.msra.mxu0 %v312_v5  ;;  %2568 = vmatpush3.msra.mxu1 %v969_v26  ;;  %v967_v29 = vld [vmem:[%s3799_s3 + $0x50] sm:$0xff]  ;;  %v965_v32 = vld [vmem:[%s3799_s3 + $0x40] sm:$0xff]  ;;  %v964_v33 = vld [vmem:[%s3799_s3 + $0x38] sm:$0xff] }
  0x1b   : > { %2133 = vmatprep.subr.mxu0 %v2765_v1  ;;  %2553 = vmatprep.subr.mxu1 %v2765_v1  ;;  %v262_v34 = vld [vmem:[%s2866_s27 + $0x80] sm:$0xff]  ;;  %v963_v35 = vld [vmem:[%s3799_s3 + $0x30] sm:$0xff]  ;;  %v263_v36 = vld [vmem:[%s2866_s27 + $0x88] sm:$0xff] }
  0x1c   : > { %2134 = vmatpush3.msra.mxu0 %v311_v6  ;;  %2569 = vmatpush3.msra.mxu1 %v968_v27  ;;  %v962_v37 = vld [vmem:[%s3799_s3 + $0x28] sm:$0xff]  ;;  %v961_v38 = vld [vmem:[%s3799_s3 + $0x20] sm:$0xff]  ;;  %v264_v39 = vld [vmem:[%s2866_s27 + $0x90] sm:$0xff] }
  0x1d   : > { %2135 = vmatprep.subr.mxu0 %v2765_v1  ;;  %2554 = vmatprep.subr.mxu1 %v2765_v1  ;;  %v960_v40 = vld [vmem:[%s3799_s3 + $0x18] sm:$0xff]  ;;  %v959_v41 = vld [vmem:[%s3799_s3 + $0x10] sm:$0xff]  ;;  %v958_v43 = vld [vmem:[%s3799_s3 + $0x8] sm:$0xff] }
  0x1e   : > { %2136 = vmatpush3.msra.mxu0 %v310_v7  ;;  %2570 = vmatpush3.msra.mxu1 %v967_v29  ;;  %v265_v42 = vld [vmem:[%s2866_s27 + $0x98] sm:$0xff]  ;;  %v957_v44 = vld [vmem:[%s3799_s3] sm:$0xff]  ;;  %v267_v46 = vld [vmem:[%s2866_s27 + $0xa8] sm:$0xff] }
  0x1f   : > { %2137 = vmatprep.subr.mxu0 %v2765_v1  ;;  %2555 = vmatprep.subr.mxu1 %v2765_v1  ;;  %v266_v45 = vld [vmem:[%s2866_s27 + $0xa0] sm:$0xff]  ;;  %v268_v47 = vld [vmem:[%s2866_s27 + $0xb0] sm:$0xff]  ;;  %v269_v48 = vld [vmem:[%s2866_s27 + $0xb8] sm:$0xff] }
  0x20   : > { %2138 = vmatpush3.msra.mxu0 %v309_v8  ;;  %2571 = vmatpush3.msra.mxu1 %v966_v30  ;;  %v270_v49 = vld [vmem:[%s2866_s27 + $0xc0] sm:$0xff]  ;;  %v271_v50 = vld [vmem:[%s2866_s27 + $0xc8] sm:$0xff]  ;;  %v272_v51 = vld [vmem:[%s2866_s27 + $0xd0] sm:$0xff] }
  0x21   : > { %2140 = vmatmul.mubr.msk.f32.vlgmr.msra.gmra.mxu0 %vm324_vm1, %v246_v9  ;;  %2328 = vmatprep.subr.mxu0 %v2765_v1  ;;  %v273_v52 = vld [vmem:[%s2866_s27 + $0xd8] sm:$0xff]  ;;  %v274_v53 = vld [vmem:[%s2866_s27 + $0xe0] sm:$0xff]  ;;  %v275_v54 = vld [vmem:[%s2866_s27 + $0xe8] sm:$0xff] }
  0x22   : > { %2142 = vmatprep.mubr.msk.f32.mxu0 %vm2766_vm0, %v2765_v1  ;;  %2329 = vmatpush3.msra.mxu0 %v972_v21  ;;  %v276_v55 = vld [vmem:[%s2866_s27 + $0xf0] sm:$0xff]  ;;  %v277_v56 = vld [vmem:[%s2866_s27 + $0xf8] sm:$0xff]  ;;  %v278_v57 = vld [vmem:[%s2866_s27 + $0x100] sm:$0xff] }
  0x23   : > { %2330 = vmatprep.subr.mxu0 %v2765_v1  ;;  %2556 = vmatprep.subr.mxu1 %v2765_v1  ;;  %v279_v58 = vld [vmem:[%s2866_s27 + $0x108] sm:$0xff]  ;;  %v280_v59 = vld [vmem:[%s2866_s27 + $0x110] sm:$0xff]  ;;  %v281_v60 = vld [vmem:[%s2866_s27 + $0x118] sm:$0xff] }
  0x24   : > { %2331 = vmatpush3.msra.mxu0 %v971_v23  ;;  %2572 = vmatpush3.msra.mxu1 %v965_v32  ;;  %v282_v61 = vld [vmem:[%s2866_s27 + $0x120] sm:$0xff]  ;;  %v283_v62 = vld [vmem:[%s2866_s27 + $0x128] sm:$0xff]  ;;  %v284_v63 = vld [vmem:[%s2866_s27 + $0x130] sm:$0xff] }
  0x25   : > { %2143 = vmatmul.mubr.msk.f32.gmra.mxu0 %vm324_vm1, %v247_v10  ;;  %2332 = vmatprep.subr.mxu0 %v2765_v1  ;;  %v285_v0 = vld [vmem:[%s2866_s27 + $0x138] sm:$0xff]  ;;  %v286_v2 = vld [vmem:[%s2866_s27 + $0x140] sm:$0xff]  ;;  %v287_v3 = vld [vmem:[%s2866_s27 + $0x148] sm:$0xff] }
  0x26   : > { %2145 = vmatprep.mubr.msk.f32.mxu0 %vm2766_vm0, %v2765_v1  ;;  %2333 = vmatpush3.msra.mxu0 %v970_v24  ;;  %v288_v4 = vld [vmem:[%s2866_s27 + $0x150] sm:$0xff]  ;;  %v289_v5 = vld [vmem:[%s2866_s27 + $0x158] sm:$0xff]  ;;  %v290_v6 = vld [vmem:[%s2866_s27 + $0x160] sm:$0xff] }
  0x27   : > { %2334 = vmatprep.subr.mxu0 %v2765_v1  ;;  %2557 = vmatprep.subr.mxu1 %v2765_v1  ;;  %v291_v7 = vld [vmem:[%s2866_s27 + $0x168] sm:$0xff]  ;;  %v292_v8 = vld [vmem:[%s2866_s27 + $0x170] sm:$0xff]  ;;  %v293_v9 = vld [vmem:[%s2866_s27 + $0x178] sm:$0xff] }
  0x28   : > { %2335 = vmatpush3.msra.mxu0 %v969_v26  ;;  %2573 = vmatpush3.msra.mxu1 %v964_v33  ;;  %v294_v10 = vld [vmem:[%s2866_s27 + $0x180] sm:$0xff] }
  0x29   : > { %2146 = vmatmul.mubr.msk.f32.gmra.mxu0 %vm324_vm1, %v248_v11  ;;  %2336 = vmatprep.subr.mxu0 %v2765_v1 }
  0x2a   : > { %2148 = vmatprep.mubr.msk.f32.mxu0 %vm2766_vm0, %v2765_v1  ;;  %2337 = vmatpush3.msra.mxu0 %v968_v27 }
  0x2b   : > { %2558 = vmatprep.subr.mxu1 %v2765_v1  ;;  %2338 = vmatprep.subr.mxu0 %v2765_v1 }
  0x2c   : > { %2574 = vmatpush3.msra.mxu1 %v963_v35  ;;  %2339 = vmatpush3.msra.mxu0 %v967_v29 }
  0x2d   : > { %2149 = vmatmul.mubr.msk.f32.gmra.mxu0 %vm324_vm1, %v249_v12  ;;  %2559 = vmatprep.subr.mxu1 %v2765_v1  ;;  %v295_v12 = vld [vmem:[%s2866_s27 + $0x188] sm:$0xff] }
  0x2e   : > { %2151 = vmatprep.mubr.msk.f32.mxu0 %vm2766_vm0, %v2765_v1  ;;  %2575 = vmatpush3.msra.mxu1 %v962_v37 }
  0x2f   : > { %2560 = vmatprep.subr.mxu1 %v2765_v1  ;;  %2340 = vmatprep.subr.mxu0 %v2765_v1 }
  0x30   : > { %2576 = vmatpush3.msra.mxu1 %v961_v38  ;;  %2341 = vmatpush3.msra.mxu0 %v966_v30  ;;  %v299_v30 = vld [vmem:[%s2866_s27 + $0x1a8] sm:$0xff] }
  0x31   : > { %2152 = vmatmul.mubr.msk.f32.gmra.mxu0 %vm324_vm1, %v250_v13  ;;  %2561 = vmatprep.subr.mxu1 %v2765_v1 }
  0x32   : > { %2154 = vmatprep.mubr.msk.f32.mxu0 %vm2766_vm0, %v2765_v1  ;;  %2577 = vmatpush3.msra.mxu1 %v960_v40 }
  0x33   : > { %2562 = vmatprep.subr.mxu1 %v2765_v1  ;;  %2342 = vmatprep.subr.mxu0 %v2765_v1 }
  0x34   : > { %2578 = vmatpush3.msra.mxu1 %v959_v41  ;;  %2343 = vmatpush3.msra.mxu0 %v965_v32 }
  0x35   : > { %2155 = vmatmul.mubr.msk.f32.gmra.mxu0 %vm324_vm1, %v251_v14  ;;  %2563 = vmatprep.subr.mxu1 %v2765_v1 }
  0x36   : > { %2157 = vmatprep.mubr.msk.f32.mxu0 %vm2766_vm0, %v2765_v1  ;;  %2579 = vmatpush3.msra.mxu1 %v958_v43 }
  0x37   : > { %2564 = vmatprep.subr.mxu1 %v2765_v1  ;;  %2344 = vmatprep.subr.mxu0 %v2765_v1 }
  0x38   : > { %2580 = vmatpush3.msra.mxu1 %v957_v44  ;;  %2345 = vmatpush3.msra.mxu0 %v964_v33 }
  0x39   : > { %2158 = vmatmul.mubr.msk.f32.gmra.mxu0 %vm324_vm1, %v252_v15  ;;  %2346 = vmatprep.subr.mxu0 %v2765_v1  ;;  %v296_v15 = vld [vmem:[%s2866_s27 + $0x190] sm:$0xff] }
  0x3a   : > { %2160 = vmatprep.mubr.msk.f32.mxu0 %vm2766_vm0, %v2765_v1  ;;  %2347 = vmatpush3.msra.mxu0 %v963_v35  ;;  %v300_v35 = vld [vmem:[%s2866_s27 + $0x1b0] sm:$0xff] }
  0x3b   : > { %2348 = vmatprep.subr.mxu0 %v2765_v1 }
  0x3c   : > { %2349 = vmatpush3.msra.mxu0 %v962_v37 }
  0x3d   : > { %2161 = vmatmul.mubr.msk.f32.gmra.mxu0 %vm324_vm1, %v253_v16  ;;  %2350 = vmatprep.subr.mxu0 %v2765_v1 }
  0x3e   : > { %2163 = vmatprep.mubr.msk.f32.mxu0 %vm2766_vm0, %v2765_v1  ;;  %2351 = vmatpush3.msra.mxu0 %v961_v38 }
  0x3f   : > { %2352 = vmatprep.subr.mxu0 %v2765_v1 }
  0x40   : > { %2353 = vmatpush3.msra.mxu0 %v960_v40  ;;  %v301_v40 = vld [vmem:[%s2866_s27 + $0x1b8] sm:$0xff] }
  0x41   : > { %2164 = vmatmul.mubr.msk.f32.gmra.mxu0 %vm324_vm1, %v254_v17  ;;  %2354 = vmatprep.subr.mxu0 %v2765_v1  ;;  %v3160_v17 = vld [vmem:[%s3798_s2] ss:$0 sm:$0xff] }
  0x42   : > { %2166 = vmatprep.mubr.msk.f32.mxu0 %vm2766_vm0, %v2765_v1  ;;  %2355 = vmatpush3.msra.mxu0 %v959_v41 }
  0x43   : > { %2356 = vmatprep.subr.mxu0 %v2765_v1 }
  0x44   : > { %2357 = vmatpush3.msra.mxu0 %v958_v43 }
  0x45   : > { %2167 = vmatmul.mubr.msk.f32.gmra.mxu0 %vm324_vm1, %v255_v18  ;;  %2358 = vmatprep.subr.mxu0 %v2765_v1 }
  0x46   : > { %2169 = vmatprep.mubr.msk.f32.mxu0 %vm2766_vm0, %v2765_v1  ;;  %2359 = vmatpush3.msra.mxu0 %v957_v44 }
  0x49   : > { %2170 = vmatmul.mubr.msk.f32.gmra.mxu0 %vm324_vm1, %v256_v19 }
  0x4a   : > { %2172 = vmatprep.mubr.msk.f32.mxu0 %vm2766_vm0, %v2765_v1 }
  0x4d   : > { %2173 = vmatmul.mubr.msk.f32.gmra.mxu0 %vm324_vm1, %v257_v20  ;;  %v297_v20 = vld [vmem:[%s2866_s27 + $0x198] sm:$0xff] }
  0x4e   : > { %2175 = vmatprep.mubr.msk.f32.mxu0 %vm2766_vm0, %v2765_v1 }
  0x51   : > { %2176 = vmatmul.mubr.msk.f32.gmra.mxu0 %vm324_vm1, %v258_v22 }
  0x52   : > { %2178 = vmatprep.mubr.msk.f32.mxu0 %vm2766_vm0, %v2765_v1 }
  0x55   : > { %2179 = vmatmul.mubr.msk.f32.gmra.mxu0 %vm324_vm1, %v259_v25  ;;  %v298_v25 = vld [vmem:[%s2866_s27 + $0x1a0] sm:$0xff] }
  0x56   : > { %2181 = vmatprep.mubr.msk.f32.mxu0 %vm2766_vm0, %v2765_v1 }
  0x59   : > { %2182 = vmatmul.mubr.msk.f32.gmra.mxu0 %vm324_vm1, %v260_v28 }
  0x5a   : > { %2184 = vmatprep.mubr.msk.f32.mxu0 %vm2766_vm0, %v2765_v1 }
  0x5d   : > { %2185 = vmatmul.mubr.msk.f32.gmra.mxu0 %vm324_vm1, %v261_v31 }
  0x5e   : > { %2187 = vmatprep.mubr.msk.f32.mxu0 %vm2766_vm0, %v2765_v1 }
  0x61   : > { %2188 = vmatmul.mubr.msk.f32.gmra.mxu0 %vm324_vm1, %v262_v34 }
  0x62   : > { %2190 = vmatprep.mubr.msk.f32.mxu0 %vm2766_vm0, %v2765_v1 }
  0x65   : > { %2191 = vmatmul.mubr.msk.f32.gmra.mxu0 %vm324_vm1, %v263_v36 }
  0x66   : > { %2193 = vmatprep.mubr.msk.f32.mxu0 %vm2766_vm0, %v2765_v1 }
  0x69   : > { %2194 = vmatmul.mubr.msk.f32.gmra.mxu0 %vm324_vm1, %v264_v39 }
  0x6a   : > { %2196 = vmatprep.mubr.msk.f32.mxu0 %vm2766_vm0, %v2765_v1 }
  0x6d   : > { %2197 = vmatmul.mubr.msk.f32.gmra.mxu0 %vm324_vm1, %v265_v42 }
  0x6e   : > { %2199 = vmatprep.mubr.msk.f32.mxu0 %vm2766_vm0, %v2765_v1 }
  0x71   : > { %2200 = vmatmul.mubr.msk.f32.gmra.mxu0 %vm324_vm1, %v266_v45  ;;  %v302_v45 = vld [vmem:[%s2866_s27 + $0x1c0] sm:$0xff] }
  0x72   : > { %2202 = vmatprep.mubr.msk.f32.mxu0 %vm2766_vm0, %v2765_v1 }
  0x75   : > { %2203 = vmatmul.mubr.msk.f32.gmra.mxu0 %vm324_vm1, %v267_v46 }
  0x76   : > { %2205 = vmatprep.mubr.msk.f32.mxu0 %vm2766_vm0, %v2765_v1 }
  0x79   : > { %2206 = vmatmul.mubr.msk.f32.gmra.mxu0 %vm324_vm1, %v268_v47 }
  0x7a   : > { %2208 = vmatprep.mubr.msk.f32.mxu0 %vm2766_vm0, %v2765_v1 }
  0x7d   : > { %2209 = vmatmul.mubr.msk.f32.gmra.mxu0 %vm324_vm1, %v269_v48 }
  0x7e   : > { %2211 = vmatprep.mubr.msk.f32.mxu0 %vm2766_vm0, %v2765_v1 }
  0x81   : > { %2212 = vmatmul.mubr.msk.f32.gmra.mxu0 %vm324_vm1, %v270_v49 }
  0x82   : > { %2214 = vmatprep.mubr.msk.f32.mxu0 %vm2766_vm0, %v2765_v1 }
  0x85   : > { %2215 = vmatmul.mubr.msk.f32.gmra.mxu0 %vm324_vm1, %v271_v50  ;;  %v303_v50 = vld [vmem:[%s2866_s27 + $0x1c8] sm:$0xff] }
  0x86   : > { %2217 = vmatprep.mubr.msk.f32.mxu0 %vm2766_vm0, %v2765_v1 }
  0x89   : > { %2218 = vmatmul.mubr.msk.f32.gmra.mxu0 %vm324_vm1, %v272_v51 }
  0x8a   : > { %2220 = vmatprep.mubr.msk.f32.mxu0 %vm2766_vm0, %v2765_v1 }
  0x8d   : > { %2221 = vmatmul.mubr.msk.f32.gmra.mxu0 %vm324_vm1, %v273_v52 }
  0x8e   : > { %2223 = vmatprep.mubr.msk.f32.mxu0 %vm2766_vm0, %v2765_v1 }
  0x91   : > { %2224 = vmatmul.mubr.msk.f32.gmra.mxu0 %vm324_vm1, %v274_v53 }
  0x92   : > { %2226 = vmatprep.mubr.msk.f32.mxu0 %vm2766_vm0, %v2765_v1 }
  0x95   : > { %2227 = vmatmul.mubr.msk.f32.gmra.mxu0 %vm324_vm1, %v275_v54 }
  0x96   : > { %2229 = vmatprep.mubr.msk.f32.mxu0 %vm2766_vm0, %v2765_v1 }
  0x99   : > { %2230 = vmatmul.mubr.msk.f32.gmra.mxu0 %vm324_vm1, %v276_v55  ;;  %v304_v55 = vld [vmem:[%s2866_s27 + $0x1d0] sm:$0xff] }
  0x9a   : > { %2232 = vmatprep.mubr.msk.f32.mxu0 %vm2766_vm0, %v2765_v1 }
  0x9d   : > { %2233 = vmatmul.mubr.msk.f32.gmra.mxu0 %vm324_vm1, %v277_v56 }
  0x9e   : > { %2235 = vmatprep.mubr.msk.f32.mxu0 %vm2766_vm0, %v2765_v1 }
  0xa1   : > { %2236 = vmatmul.mubr.msk.f32.gmra.mxu0 %vm324_vm1, %v278_v57 }
  0xa2   : > { %2238 = vmatprep.mubr.msk.f32.mxu0 %vm2766_vm0, %v2765_v1 }
  0xa5   : > { %2239 = vmatmul.mubr.msk.f32.gmra.mxu0 %vm324_vm1, %v279_v58 }
  0xa6   : > { %2241 = vmatprep.mubr.msk.f32.mxu0 %vm2766_vm0, %v2765_v1 }
  0xa9   : > { %2242 = vmatmul.mubr.msk.f32.gmra.mxu0 %vm324_vm1, %v280_v59 }
  0xaa   : > { %2244 = vmatprep.mubr.msk.f32.mxu0 %vm2766_vm0, %v2765_v1 }
  0xad   : > { %2245 = vmatmul.mubr.msk.f32.gmra.mxu0 %vm324_vm1, %v281_v60  ;;  %v305_v60 = vld [vmem:[%s2866_s27 + $0x1d8] sm:$0xff] }
  0xae   : > { %2247 = vmatprep.mubr.msk.f32.mxu0 %vm2766_vm0, %v2765_v1 }
  0xb1   : > { %2248 = vmatmul.mubr.msk.f32.gmra.mxu0 %vm324_vm1, %v282_v61 }
  0xb2   : > { %2250 = vmatprep.mubr.msk.f32.mxu0 %vm2766_vm0, %v2765_v1 }
  0xb5   : > { %2251 = vmatmul.mubr.msk.f32.gmra.mxu0 %vm324_vm1, %v283_v62 }
  0xb6   : > { %2253 = vmatprep.mubr.msk.f32.mxu0 %vm2766_vm0, %v2765_v1 }
  0xb9   : > { %2254 = vmatmul.mubr.msk.f32.gmra.mxu0 %vm324_vm1, %v284_v63 }
  0xba   : > { %2256 = vmatprep.mubr.msk.f32.mxu0 %vm2766_vm0, %v2765_v1 }
  0xbd   : > { %2257 = vmatmul.mubr.msk.f32.gmra.mxu0 %vm324_vm1, %v285_v0 }
  0xbe   : > { %2259 = vmatprep.mubr.msk.f32.mxu0 %vm2766_vm0, %v2765_v1 }
  0xc1   : > { %2260 = vmatmul.mubr.msk.f32.gmra.mxu0 %vm324_vm1, %v286_v2  ;;  %v306_v2 = vld [vmem:[%s2866_s27 + $0x1e0] sm:$0xff] }
  0xc2   : > { %2262 = vmatprep.mubr.msk.f32.mxu0 %vm2766_vm0, %v2765_v1 }
  0xc5   : > { %2263 = vmatmul.mubr.msk.f32.gmra.mxu0 %vm324_vm1, %v287_v3 }
  0xc6   : > { %2265 = vmatprep.mubr.msk.f32.mxu0 %vm2766_vm0, %v2765_v1 }
  0xc9   : > { %2266 = vmatmul.mubr.msk.f32.gmra.mxu0 %vm324_vm1, %v288_v4 }
  0xca   : > { %2268 = vmatprep.mubr.msk.f32.mxu0 %vm2766_vm0, %v2765_v1 }
  0xcd   : > { %2269 = vmatmul.mubr.msk.f32.gmra.mxu0 %vm324_vm1, %v289_v5 }
  0xce   : > { %2271 = vmatprep.mubr.msk.f32.mxu0 %vm2766_vm0, %v2765_v1 }
  0xd1   : > { %2272 = vmatmul.mubr.msk.f32.gmra.mxu0 %vm324_vm1, %v290_v6 }
  0xd2   : > { %2274 = vmatprep.mubr.msk.f32.mxu0 %vm2766_vm0, %v2765_v1 }
  0xd5   : > { %2275 = vmatmul.mubr.msk.f32.gmra.mxu0 %vm324_vm1, %v291_v7  ;;  %v307_v7 = vld [vmem:[%s2866_s27 + $0x1e8] sm:$0xff] }
  0xd6   : > { %2277 = vmatprep.mubr.msk.f32.mxu0 %vm2766_vm0, %v2765_v1 }
  0xd9   : > { %2278 = vmatmul.mubr.msk.f32.gmra.mxu0 %vm324_vm1, %v292_v8 }
  0xda   : > { %2280 = vmatprep.mubr.msk.f32.mxu0 %vm2766_vm0, %v2765_v1 }
  0xdd   : > { %2281 = vmatmul.mubr.msk.f32.gmra.mxu0 %vm324_vm1, %v293_v9 }
  0xde   : > { %2283 = vmatprep.mubr.msk.f32.mxu0 %vm2766_vm0, %v2765_v1 }
  0xe1   : > { %v3145_v11 = vpop.f32.mrf.mxu0  ;;  %2284 = vmatmul.mubr.msk.f32.gmra.mxu0 %vm324_vm1, %v294_v10 }
  0xe2   : > { %2286 = vmatprep.mubr.msk.f32.mxu0 %vm2766_vm0, %v2765_v1 }
  0xe3   : > { %v2141_v13 = vpop.f32.mrf.mxu0 }
  0xe4   : > { %v308_v13 = vld [vmem:[%s2866_s27 + $0x1f0] sm:$0xff]  ;;  %s224_s27 = sand.u32 1, %s2723_s18  }
  0xe5   : > { %v3151_v14 = vpop.f32.mrf.mxu0  ;;  %2287 = vmatmul.mubr.msk.f32.gmra.mxu0 %vm324_vm1, %v295_v12  ;;  %s2581_s6 = smul.u32 504, %s224_s27 }
  0xe6   : > { %2289 = vmatprep.mubr.msk.f32.mxu0 %vm2766_vm0, %v2765_v1 }
  0xe7   : > { %v2144_v16 = vpop.f32.mrf.mxu0  ;;  %s3374_s18 = scalar_lea.vmem [#allocation2], %s2581_s6  }
  0xe9   : > { %v590_v18 = vpop.f32.mrf.mxu0  ;;  %2290 = vmatmul.mubr.msk.f32.gmra.mxu0 %vm324_vm1, %v296_v15  ;;  %v581_v15 = vadd.f32 %v3160_v17, %v3145_v11 }
  0xea   : > { %v591_v19 = vadd.f32 %v3160_v17, %v590_v18  ;;  %2292 = vmatprep.mubr.msk.f32.mxu0 %vm2766_vm0, %v2765_v1 }
  0xeb   : > { %v2147_v21 = vpop.f32.mrf.mxu0 }
  0xec   : > { %v896_v22 = vmax.f32 %v591_v19, 0.0  ;;  %v894_v21 = vmax.f32 %v581_v15, 0.0 }
  0xed   : > { %v595_v23 = vpop.f32.mrf.mxu0  ;;  %2293 = vmatmul.mubr.msk.f32.gmra.mxu0 %vm324_vm1, %v297_v20 }
  0xee   : > { %v596_v24 = vadd.f32 %v3160_v17, %v595_v23  ;;  %2367 = vmatmul.mubr.f32.vlgmr.msra.gmra.mxu1 %v896_v22  ;;  %2295 = vmatprep.mubr.msk.f32.mxu0 %vm2766_vm0, %v2765_v1  ;;  %v586_v22 = vadd.f32 %v3160_v17, %v3151_v14 }
  0xef   : > { %v2150_v26 = vpop.f32.mrf.mxu0  ;;  %2369 = vmatprep.mubr.msk.f32.mxu1 %vm2766_vm0, %v2765_v1 }
  0xf0   : > { %v897_v27 = vmax.f32 %v596_v24, 0.0  ;;  %v895_v26 = vmax.f32 %v586_v22, 0.0 }
  0xf1   : > { %v600_v28 = vpop.f32.mrf.mxu0  ;;  %2296 = vmatmul.mubr.msk.f32.gmra.mxu0 %vm324_vm1, %v298_v25 }
  0xf2   : > { %v601_v29 = vadd.f32 %v3160_v17, %v600_v28  ;;  %2370 = vmatmul.mubr.f32.gmra.mxu1 %v897_v27  ;;  %2298 = vmatprep.mubr.msk.f32.mxu0 %vm2766_vm0, %v2765_v1 }
  0xf3   : > { %v2153_v31 = vpop.f32.mrf.mxu0  ;;  %2372 = vmatprep.mubr.msk.f32.mxu1 %vm2766_vm0, %v2765_v1 }
  0xf4   : > { %v898_v32 = vmax.f32 %v601_v29, 0.0 }
  0xf5   : > { %v605_v33 = vpop.f32.mrf.mxu0  ;;  %2299 = vmatmul.mubr.msk.f32.gmra.mxu0 %vm324_vm1, %v299_v30 }
  0xf6   : > { %v606_v34 = vadd.f32 %v3160_v17, %v605_v33  ;;  %2373 = vmatmul.mubr.f32.gmra.mxu1 %v898_v32  ;;  %2301 = vmatprep.mubr.msk.f32.mxu0 %vm2766_vm0, %v2765_v1 }
  0xf7   : > { %v2156_v36 = vpop.f32.mrf.mxu0  ;;  %2375 = vmatprep.mubr.msk.f32.mxu1 %vm2766_vm0, %v2765_v1 }
  0xf8   : > { %v899_v37 = vmax.f32 %v606_v34, 0.0 }
  0xf9   : > { %v610_v38 = vpop.f32.mrf.mxu0  ;;  %2302 = vmatmul.mubr.msk.f32.gmra.mxu0 %vm324_vm1, %v300_v35 }
  0xfa   : > { %v611_v39 = vadd.f32 %v3160_v17, %v610_v38  ;;  %2376 = vmatmul.mubr.f32.gmra.mxu1 %v899_v37  ;;  %2304 = vmatprep.mubr.msk.f32.mxu0 %vm2766_vm0, %v2765_v1 }
  0xfb   : > { %v2159_v41 = vpop.f32.mrf.mxu0  ;;  %2378 = vmatprep.mubr.msk.f32.mxu1 %vm2766_vm0, %v2765_v1 }
  0xfc   : > { %v900_v42 = vmax.f32 %v611_v39, 0.0 }
  0xfd   : > { %v615_v43 = vpop.f32.mrf.mxu0  ;;  %2305 = vmatmul.mubr.msk.f32.gmra.mxu0 %vm324_vm1, %v301_v40 }
  0xfe   : > { %v616_v44 = vadd.f32 %v3160_v17, %v615_v43  ;;  %2379 = vmatmul.mubr.f32.gmra.mxu1 %v900_v42  ;;  %2307 = vmatprep.mubr.msk.f32.mxu0 %vm2766_vm0, %v2765_v1 }
  0xff   : > { %v2162_v46 = vpop.f32.mrf.mxu0  ;;  %2381 = vmatprep.mubr.msk.f32.mxu1 %vm2766_vm0, %v2765_v1 }
 0x100   : > { %v901_v47 = vmax.f32 %v616_v44, 0.0 }
 0x101   : > { %v620_v48 = vpop.f32.mrf.mxu0  ;;  %2308 = vmatmul.mubr.msk.f32.gmra.mxu0 %vm324_vm1, %v302_v45 }
 0x102   : > { %v621_v49 = vadd.f32 %v3160_v17, %v620_v48  ;;  %2382 = vmatmul.mubr.f32.gmra.mxu1 %v901_v47  ;;  %2310 = vmatprep.mubr.msk.f32.mxu0 %vm2766_vm0, %v2765_v1 }
 0x103   : > { %v2165_v51 = vpop.f32.mrf.mxu0  ;;  %2384 = vmatprep.mubr.msk.f32.mxu1 %vm2766_vm0, %v2765_v1 }
 0x104   : > { %v902_v52 = vmax.f32 %v621_v49, 0.0 }
 0x105   : > { %v625_v53 = vpop.f32.mrf.mxu0  ;;  %2311 = vmatmul.mubr.msk.f32.gmra.mxu0 %vm324_vm1, %v303_v50 }
 0x106   : > { %v626_v54 = vadd.f32 %v3160_v17, %v625_v53  ;;  %2385 = vmatmul.mubr.f32.gmra.mxu1 %v902_v52  ;;  %2313 = vmatprep.mubr.msk.f32.mxu0 %vm2766_vm0, %v2765_v1 }
 0x107   : > { %v2168_v56 = vpop.f32.mrf.mxu0  ;;  %2387 = vmatprep.mubr.msk.f32.mxu1 %vm2766_vm0, %v2765_v1 }
 0x108   : > { %v903_v57 = vmax.f32 %v626_v54, 0.0 }
 0x109   : > { %v630_v58 = vpop.f32.mrf.mxu0  ;;  %2314 = vmatmul.mubr.msk.f32.gmra.mxu0 %vm324_vm1, %v304_v55 }
 0x10a   : > { %v631_v59 = vadd.f32 %v3160_v17, %v630_v58  ;;  %2388 = vmatmul.mubr.f32.gmra.mxu1 %v903_v57  ;;  %2316 = vmatprep.mubr.msk.f32.mxu0 %vm2766_vm0, %v2765_v1 }
 0x10b   : > { %v2171_v61 = vpop.f32.mrf.mxu0  ;;  %2390 = vmatprep.mubr.msk.f32.mxu1 %vm2766_vm0, %v2765_v1 }
 0x10c   : > { %v904_v62 = vmax.f32 %v631_v59, 0.0 }
 0x10d   : > { %v635_v63 = vpop.f32.mrf.mxu0  ;;  %2317 = vmatmul.mubr.msk.f32.gmra.mxu0 %vm324_vm1, %v305_v60 }
 0x10e   : > { %v636_v0 = vadd.f32 %v3160_v17, %v635_v63  ;;  %2391 = vmatmul.mubr.f32.gmra.mxu1 %v904_v62  ;;  %2319 = vmatprep.mubr.msk.f32.mxu0 %vm2766_vm0, %v2765_v1 }
 0x10f   : > { %v2174_v3 = vpop.f32.mrf.mxu0  ;;  %2393 = vmatprep.mubr.msk.f32.mxu1 %vm2766_vm0, %v2765_v1 }
 0x110   : > { %v905_v4 = vmax.f32 %v636_v0, 0.0 }
 0x111   : > { %v640_v5 = vpop.f32.mrf.mxu0  ;;  %2320 = vmatmul.mubr.msk.f32.gmra.mxu0 %vm324_vm1, %v306_v2 }
 0x112   : > { %v641_v6 = vadd.f32 %v3160_v17, %v640_v5  ;;  %2394 = vmatmul.mubr.f32.gmra.mxu1 %v905_v4  ;;  %2322 = vmatprep.mubr.msk.f32.mxu0 %vm2766_vm0, %v2765_v1 }
 0x113   : > { %v2177_v8 = vpop.f32.mrf.mxu0  ;;  %2396 = vmatprep.mubr.msk.f32.mxu1 %vm2766_vm0, %v2765_v1 }
 0x114   : > { %v906_v9 = vmax.f32 %v641_v6, 0.0 }
 0x115   : > { %v645_v10 = vpop.f32.mrf.mxu0  ;;  %2323 = vmatmul.mubr.msk.f32.gmra.mxu0 %vm324_vm1, %v307_v7 }
 0x116   : > { %v646_v12 = vadd.f32 %v3160_v17, %v645_v10  ;;  %2397 = vmatmul.mubr.f32.gmra.mxu1 %v906_v9  ;;  %2325 = vmatprep.mubr.msk.f32.mxu0 %vm2766_vm0, %v2765_v1 }
 0x117   : > { %v2180_v16 = vpop.f32.mrf.mxu0  ;;  %2399 = vmatprep.mubr.msk.f32.mxu1 %vm2766_vm0, %v2765_v1 }
 0x118   : > { %v907_v18 = vmax.f32 %v646_v12, 0.0 }
 0x119   : > { %v650_v19 = vpop.f32.mrf.mxu0  ;;  %2326 = vmatmul.mubr.msk.f32.gmra.mxu0 %vm324_vm1, %v308_v13 }
 0x11a   : > { %v651_v20 = vadd.f32 %v3160_v17, %v650_v19  ;;  %2400 = vmatmul.mubr.f32.gmra.mxu1 %v907_v18  ;;  %2360 = vmatprep.mubr.msk.f32.mxu0 %vm2766_vm0, %v2765_v1 }
 0x11b   : > { %v2183_v23 = vpop.f32.mrf.mxu0  ;;  %2402 = vmatprep.mubr.msk.f32.mxu1 %vm2766_vm0, %v2765_v1 }
 0x11c   : > { %v908_v11 = vmax.f32 %v651_v20, 0.0 }
 0x11d   : > { %v655_v24 = vpop.f32.mrf.mxu0  ;;  %2361 = vmatmul.mubr.f32.vlgmr.msra.gmra.mxu0 %v894_v21 }
 0x11e   : > { %v656_v25 = vadd.f32 %v3160_v17, %v655_v24  ;;  %2403 = vmatmul.mubr.f32.gmra.mxu1 %v908_v11  ;;  %2363 = vmatprep.mubr.msk.f32.mxu0 %vm2766_vm0, %v2765_v1 }
 0x11f   : > { %v2186_v27 = vpop.f32.mrf.mxu0  ;;  %2405 = vmatprep.mubr.msk.f32.mxu1 %vm2766_vm0, %v2765_v1 }
 0x120   : > { %v909_v28 = vmax.f32 %v656_v25, 0.0 }
 0x121   : > { %v660_v14 = vpop.f32.mrf.mxu0  ;;  %2364 = vmatmul.mubr.f32.gmra.mxu0 %v895_v26 }
 0x122   : > { %v661_v29 = vadd.f32 %v3160_v17, %v660_v14  ;;  %2406 = vmatmul.mubr.f32.gmra.mxu1 %v909_v28 }
 0x123   : > { %v2189_v30 = vpop.f32.mrf.mxu0  ;;  %2408 = vmatprep.mubr.msk.f32.mxu1 %vm2766_vm0, %v2765_v1 }
 0x124   : > { %v910_v31 = vmax.f32 %v661_v29, 0.0 }
 0x125   : > { %v665_v32 = vpop.f32.mrf.mxu0 }
 0x126   : > { %v666_v33 = vadd.f32 %v3160_v17, %v665_v32  ;;  %2409 = vmatmul.mubr.f32.gmra.mxu1 %v910_v31 }
 0x127   : > { %v2192_v34 = vpop.f32.mrf.mxu0  ;;  %2411 = vmatprep.mubr.msk.f32.mxu1 %vm2766_vm0, %v2765_v1 }
 0x128   : > { %v911_v35 = vmax.f32 %v666_v33, 0.0 }
 0x129   : > { %v670_v36 = vpop.f32.mrf.mxu0 }
 0x12a   : > { %v671_v37 = vadd.f32 %v3160_v17, %v670_v36  ;;  %2412 = vmatmul.mubr.f32.gmra.mxu1 %v911_v35 }
 0x12b   : > { %v2195_v38 = vpop.f32.mrf.mxu0  ;;  %2414 = vmatprep.mubr.msk.f32.mxu1 %vm2766_vm0, %v2765_v1 }
 0x12c   : > { %v912_v39 = vmax.f32 %v671_v37, 0.0 }
 0x12d   : > { %v675_v40 = vpop.f32.mrf.mxu0 }
 0x12e   : > { %v676_v41 = vadd.f32 %v3160_v17, %v675_v40  ;;  %2415 = vmatmul.mubr.f32.gmra.mxu1 %v912_v39 }
 0x12f   : > { %v2198_v42 = vpop.f32.mrf.mxu0  ;;  %2417 = vmatprep.mubr.msk.f32.mxu1 %vm2766_vm0, %v2765_v1 }
 0x130   : > { %v913_v43 = vmax.f32 %v676_v41, 0.0 }
 0x131   : > { %v680_v44 = vpop.f32.mrf.mxu0 }
 0x132   : > { %v681_v45 = vadd.f32 %v3160_v17, %v680_v44  ;;  %2418 = vmatmul.mubr.f32.gmra.mxu1 %v913_v43 }
 0x133   : > { %v2201_v46 = vpop.f32.mrf.mxu0  ;;  %2420 = vmatprep.mubr.msk.f32.mxu1 %vm2766_vm0, %v2765_v1 }
 0x134   : > { %v914_v47 = vmax.f32 %v681_v45, 0.0 }
 0x135   : > { %v685_v48 = vpop.f32.mrf.mxu0 }
 0x136   : > { %v686_v49 = vadd.f32 %v3160_v17, %v685_v48  ;;  %2421 = vmatmul.mubr.f32.gmra.mxu1 %v914_v47 }
 0x137   : > { %v2204_v50 = vpop.f32.mrf.mxu0  ;;  %2423 = vmatprep.mubr.msk.f32.mxu1 %vm2766_vm0, %v2765_v1 }
 0x138   : > { %v915_v51 = vmax.f32 %v686_v49, 0.0 }
 0x139   : > { %v690_v52 = vpop.f32.mrf.mxu0 }
 0x13a   : > { %v691_v53 = vadd.f32 %v3160_v17, %v690_v52  ;;  %2424 = vmatmul.mubr.f32.gmra.mxu1 %v915_v51 }
 0x13b   : > { %v2207_v54 = vpop.f32.mrf.mxu0  ;;  %2426 = vmatprep.mubr.msk.f32.mxu1 %vm2766_vm0, %v2765_v1 }
 0x13c   : > { %v916_v55 = vmax.f32 %v691_v53, 0.0 }
 0x13d   : > { %v695_v56 = vpop.f32.mrf.mxu0 }
 0x13e   : > { %v696_v57 = vadd.f32 %v3160_v17, %v695_v56  ;;  %2427 = vmatmul.mubr.f32.gmra.mxu1 %v916_v55 }
 0x13f   : > { %v2210_v58 = vpop.f32.mrf.mxu0  ;;  %2429 = vmatprep.mubr.msk.f32.mxu1 %vm2766_vm0, %v2765_v1 }
 0x140   : > { %v917_v59 = vmax.f32 %v696_v57, 0.0 }
 0x141   : > { %v700_v60 = vpop.f32.mrf.mxu0 }
 0x142   : > { %v701_v61 = vadd.f32 %v3160_v17, %v700_v60  ;;  %2430 = vmatmul.mubr.f32.gmra.mxu1 %v917_v59 }
 0x143   : > { %v2213_v62 = vpop.f32.mrf.mxu0  ;;  %2432 = vmatprep.mubr.msk.f32.mxu1 %vm2766_vm0, %v2765_v1 }
 0x144   : > { %v918_v63 = vmax.f32 %v701_v61, 0.0 }
 0x145   : > { %v705_v0 = vpop.f32.mrf.mxu0 }
 0x146   : > { %v706_v2 = vadd.f32 %v3160_v17, %v705_v0  ;;  %2433 = vmatmul.mubr.f32.gmra.mxu1 %v918_v63 }
 0x147   : > { %v2216_v3 = vpop.f32.mrf.mxu0  ;;  %2435 = vmatprep.mubr.msk.f32.mxu1 %vm2766_vm0, %v2765_v1 }
 0x148   : > { %v919_v4 = vmax.f32 %v706_v2, 0.0 }
 0x149   : > { %v710_v5 = vpop.f32.mrf.mxu0 }
 0x14a   : > { %v711_v6 = vadd.f32 %v3160_v17, %v710_v5  ;;  %2436 = vmatmul.mubr.f32.gmra.mxu1 %v919_v4 }
 0x14b   : > { %v2219_v7 = vpop.f32.mrf.mxu0  ;;  %2438 = vmatprep.mubr.msk.f32.mxu1 %vm2766_vm0, %v2765_v1 }
 0x14c   : > { %v920_v8 = vmax.f32 %v711_v6, 0.0 }
 0x14d   : > { %v715_v9 = vpop.f32.mrf.mxu0 }
 0x14e   : > { %v716_v10 = vadd.f32 %v3160_v17, %v715_v9  ;;  %2439 = vmatmul.mubr.f32.gmra.mxu1 %v920_v8 }
 0x14f   : > { %v2222_v12 = vpop.f32.mrf.mxu0  ;;  %2441 = vmatprep.mubr.msk.f32.mxu1 %vm2766_vm0, %v2765_v1 }
 0x150   : > { %v921_v13 = vmax.f32 %v716_v10, 0.0 }
 0x151   : > { %v720_v15 = vpop.f32.mrf.mxu0 }
 0x152   : > { %v721_v16 = vadd.f32 %v3160_v17, %v720_v15  ;;  %2442 = vmatmul.mubr.f32.gmra.mxu1 %v921_v13 }
 0x153   : > { %v2225_v18 = vpop.f32.mrf.mxu0  ;;  %2444 = vmatprep.mubr.msk.f32.mxu1 %vm2766_vm0, %v2765_v1 }
 0x154   : > { %v922_v19 = vmax.f32 %v721_v16, 0.0 }
 0x155   : > { %v725_v20 = vpop.f32.mrf.mxu0 }
 0x156   : > { %v726_v21 = vadd.f32 %v3160_v17, %v725_v20  ;;  %2445 = vmatmul.mubr.f32.gmra.mxu1 %v922_v19 }
 0x157   : > { %v2228_v22 = vpop.f32.mrf.mxu0  ;;  %2447 = vmatprep.mubr.msk.f32.mxu1 %vm2766_vm0, %v2765_v1 }
 0x158   : > { %v923_v23 = vmax.f32 %v726_v21, 0.0 }
 0x159   : > { %v730_v11 = vpop.f32.mrf.mxu0 }
 0x15a   : > { %v731_v24 = vadd.f32 %v3160_v17, %v730_v11  ;;  %2448 = vmatmul.mubr.f32.gmra.mxu1 %v923_v23 }
 0x15b   : > { %v2231_v25 = vpop.f32.mrf.mxu0  ;;  %2450 = vmatprep.mubr.msk.f32.mxu1 %vm2766_vm0, %v2765_v1 }
 0x15c   : > { %v924_v26 = vmax.f32 %v731_v24, 0.0 }
 0x15d   : > { %v735_v27 = vpop.f32.mrf.mxu0 }
 0x15e   : > { %v736_v28 = vadd.f32 %v3160_v17, %v735_v27  ;;  %2451 = vmatmul.mubr.f32.gmra.mxu1 %v924_v26 }
 0x15f   : > { %v2234_v14 = vpop.f32.mrf.mxu0  ;;  %2453 = vmatprep.mubr.msk.f32.mxu1 %vm2766_vm0, %v2765_v1 }
 0x160   : > { %v925_v29 = vmax.f32 %v736_v28, 0.0 }
 0x161   : > { %v740_v30 = vpop.f32.mrf.mxu0 }
 0x162   : > { %v741_v31 = vadd.f32 %v3160_v17, %v740_v30  ;;  %2454 = vmatmul.mubr.f32.gmra.mxu1 %v925_v29 }
 0x163   : > { %v2237_v32 = vpop.f32.mrf.mxu0  ;;  %2456 = vmatprep.mubr.msk.f32.mxu1 %vm2766_vm0, %v2765_v1 }
 0x164   : > { %v926_v33 = vmax.f32 %v741_v31, 0.0 }
 0x165   : > { %v745_v34 = vpop.f32.mrf.mxu0 }
 0x166   : > { %v746_v35 = vadd.f32 %v3160_v17, %v745_v34  ;;  %2457 = vmatmul.mubr.f32.gmra.mxu1 %v926_v33 }
 0x167   : > { %v2240_v36 = vpop.f32.mrf.mxu0  ;;  %2459 = vmatprep.mubr.msk.f32.mxu1 %vm2766_vm0, %v2765_v1 }
 0x168   : > { %v927_v37 = vmax.f32 %v746_v35, 0.0 }
 0x169   : > { %v750_v38 = vpop.f32.mrf.mxu0 }
 0x16a   : > { %v751_v39 = vadd.f32 %v3160_v17, %v750_v38  ;;  %2460 = vmatmul.mubr.f32.gmra.mxu1 %v927_v37 }
 0x16b   : > { %v2243_v40 = vpop.f32.mrf.mxu0  ;;  %2462 = vmatprep.mubr.msk.f32.mxu1 %vm2766_vm0, %v2765_v1 }
 0x16c   : > { %v928_v41 = vmax.f32 %v751_v39, 0.0 }
 0x16d   : > { %v755_v42 = vpop.f32.mrf.mxu0 }
 0x16e   : > { %v756_v43 = vadd.f32 %v3160_v17, %v755_v42  ;;  %2463 = vmatmul.mubr.f32.gmra.mxu1 %v928_v41 }
 0x16f   : > { %v2246_v44 = vpop.f32.mrf.mxu0  ;;  %2465 = vmatprep.mubr.msk.f32.mxu1 %vm2766_vm0, %v2765_v1 }
 0x170   : > { %v929_v45 = vmax.f32 %v756_v43, 0.0  ;;  %v3368_v44 = vld [vmem:[%s3800_s4] ss:$0 sm:$0xff] }
 0x171   : > { %v760_v46 = vpop.f32.mrf.mxu0 }
 0x172   : > { %v761_v47 = vadd.f32 %v3160_v17, %v760_v46  ;;  %2466 = vmatmul.mubr.f32.gmra.mxu1 %v929_v45 }
 0x173   : > { %v2249_v48 = vpop.f32.mrf.mxu0  ;;  %2468 = vmatprep.mubr.msk.f32.mxu1 %vm2766_vm0, %v2765_v1 }
 0x174   : > { %v930_v49 = vmax.f32 %v761_v47, 0.0 }
 0x175   : > { %v765_v50 = vpop.f32.mrf.mxu0 }
 0x176   : > { %v766_v51 = vadd.f32 %v3160_v17, %v765_v50  ;;  %2469 = vmatmul.mubr.f32.gmra.mxu1 %v930_v49 }
 0x177   : > { %v2252_v52 = vpop.f32.mrf.mxu0  ;;  %2471 = vmatprep.mubr.msk.f32.mxu1 %vm2766_vm0, %v2765_v1 }
 0x178   : > { %v931_v53 = vmax.f32 %v766_v51, 0.0 }
 0x179   : > { %v770_v54 = vpop.f32.mrf.mxu0 }
 0x17a   : > { %v771_v55 = vadd.f32 %v3160_v17, %v770_v54  ;;  %2472 = vmatmul.mubr.f32.gmra.mxu1 %v931_v53 }
 0x17b   : > { %v2255_v56 = vpop.f32.mrf.mxu0  ;;  %2474 = vmatprep.mubr.msk.f32.mxu1 %vm2766_vm0, %v2765_v1 }
 0x17c   : > { %v932_v57 = vmax.f32 %v771_v55, 0.0 }
 0x17d   : > { %v775_v58 = vpop.f32.mrf.mxu0 }
 0x17e   : > { %v776_v59 = vadd.f32 %v3160_v17, %v775_v58  ;;  %2475 = vmatmul.mubr.f32.gmra.mxu1 %v932_v57 }
 0x17f   : > { %v2258_v60 = vpop.f32.mrf.mxu0  ;;  %2477 = vmatprep.mubr.msk.f32.mxu1 %vm2766_vm0, %v2765_v1 }
 0x180   : > { %v933_v61 = vmax.f32 %v776_v59, 0.0 }
 0x181   : > { %v780_v62 = vpop.f32.mrf.mxu0 }
 0x182   : > { %v781_v63 = vadd.f32 %v3160_v17, %v780_v62  ;;  %2478 = vmatmul.mubr.f32.gmra.mxu1 %v933_v61 }
 0x183   : > { %v2261_v0 = vpop.f32.mrf.mxu0  ;;  %2480 = vmatprep.mubr.msk.f32.mxu1 %vm2766_vm0, %v2765_v1 }
 0x184   : > { %v934_v2 = vmax.f32 %v781_v63, 0.0 }
 0x185   : > { %v785_v3 = vpop.f32.mrf.mxu0 }
 0x186   : > { %v786_v4 = vadd.f32 %v3160_v17, %v785_v3  ;;  %2481 = vmatmul.mubr.f32.gmra.mxu1 %v934_v2 }
 0x187   : > { %v2264_v5 = vpop.f32.mrf.mxu0  ;;  %2483 = vmatprep.mubr.msk.f32.mxu1 %vm2766_vm0, %v2765_v1 }
 0x188   : > { %v935_v6 = vmax.f32 %v786_v4, 0.0 }
 0x189   : > { %v790_v7 = vpop.f32.mrf.mxu0 }
 0x18a   : > { %v791_v8 = vadd.f32 %v3160_v17, %v790_v7  ;;  %2484 = vmatmul.mubr.f32.gmra.mxu1 %v935_v6 }
 0x18b   : > { %v2267_v9 = vpop.f32.mrf.mxu0  ;;  %2486 = vmatprep.mubr.msk.f32.mxu1 %vm2766_vm0, %v2765_v1 }
 0x18c   : > { %v936_v10 = vmax.f32 %v791_v8, 0.0 }
 0x18d   : > { %v795_v12 = vpop.f32.mrf.mxu0 }
 0x18e   : > { %v796_v13 = vadd.f32 %v3160_v17, %v795_v12  ;;  %2487 = vmatmul.mubr.f32.gmra.mxu1 %v936_v10 }
 0x18f   : > { %v2270_v15 = vpop.f32.mrf.mxu0  ;;  %2489 = vmatprep.mubr.msk.f32.mxu1 %vm2766_vm0, %v2765_v1 }
 0x190   : > { %v937_v16 = vmax.f32 %v796_v13, 0.0 }
 0x191   : > { %v800_v18 = vpop.f32.mrf.mxu0 }
 0x192   : > { %v801_v19 = vadd.f32 %v3160_v17, %v800_v18  ;;  %2490 = vmatmul.mubr.f32.gmra.mxu1 %v937_v16 }
 0x193   : > { %v2273_v20 = vpop.f32.mrf.mxu0  ;;  %2492 = vmatprep.mubr.msk.f32.mxu1 %vm2766_vm0, %v2765_v1 }
 0x194   : > { %v938_v21 = vmax.f32 %v801_v19, 0.0 }
 0x195   : > { %v805_v22 = vpop.f32.mrf.mxu0 }
 0x196   : > { %v806_v23 = vadd.f32 %v3160_v17, %v805_v22  ;;  %2493 = vmatmul.mubr.f32.gmra.mxu1 %v938_v21 }
 0x197   : > { %v2276_v11 = vpop.f32.mrf.mxu0  ;;  %2495 = vmatprep.mubr.msk.f32.mxu1 %vm2766_vm0, %v2765_v1 }
 0x198   : > { %v939_v24 = vmax.f32 %v806_v23, 0.0 }
 0x199   : > { %v810_v25 = vpop.f32.mrf.mxu0 }
 0x19a   : > { %v811_v26 = vadd.f32 %v3160_v17, %v810_v25  ;;  %2496 = vmatmul.mubr.f32.gmra.mxu1 %v939_v24 }
 0x19b   : > { %v2279_v27 = vpop.f32.mrf.mxu0  ;;  %2498 = vmatprep.mubr.msk.f32.mxu1 %vm2766_vm0, %v2765_v1 }
 0x19c   : > { %v940_v28 = vmax.f32 %v811_v26, 0.0 }
 0x19d   : > { %v815_v14 = vpop.f32.mrf.mxu0 }
 0x19e   : > { %v816_v29 = vadd.f32 %v3160_v17, %v815_v14  ;;  %2499 = vmatmul.mubr.f32.gmra.mxu1 %v940_v28 }
 0x19f   : > { %v2282_v30 = vpop.f32.mrf.mxu0  ;;  %2501 = vmatprep.mubr.msk.f32.mxu1 %vm2766_vm0, %v2765_v1 }
 0x1a0   : > { %v941_v31 = vmax.f32 %v816_v29, 0.0 }
 0x1a1   : > { %v820_v32 = vpop.f32.mrf.mxu0 }
 0x1a2   : > { %v821_v33 = vadd.f32 %v3160_v17, %v820_v32  ;;  %2502 = vmatmul.mubr.f32.gmra.mxu1 %v941_v31 }
 0x1a3   : > { %v2285_v34 = vpop.f32.mrf.mxu0  ;;  %2504 = vmatprep.mubr.msk.f32.mxu1 %vm2766_vm0, %v2765_v1 }
 0x1a4   : > { %v942_v35 = vmax.f32 %v821_v33, 0.0 }
 0x1a5   : > { %v825_v36 = vpop.f32.mrf.mxu0 }
 0x1a6   : > { %v826_v37 = vadd.f32 %v3160_v17, %v825_v36  ;;  %2505 = vmatmul.mubr.f32.gmra.mxu1 %v942_v35 }
 0x1a7   : > { %v2288_v38 = vpop.f32.mrf.mxu0  ;;  %2507 = vmatprep.mubr.msk.f32.mxu1 %vm2766_vm0, %v2765_v1 }
 0x1a8   : > { %v943_v39 = vmax.f32 %v826_v37, 0.0 }
 0x1a9   : > { %v830_v40 = vpop.f32.mrf.mxu0 }
 0x1aa   : > { %v831_v41 = vadd.f32 %v3160_v17, %v830_v40  ;;  %2508 = vmatmul.mubr.f32.gmra.mxu1 %v943_v39 }
 0x1ab   : > { %v2291_v42 = vpop.f32.mrf.mxu0  ;;  %2510 = vmatprep.mubr.msk.f32.mxu1 %vm2766_vm0, %v2765_v1 }
 0x1ac   : > { %v944_v43 = vmax.f32 %v831_v41, 0.0 }
 0x1ad   : > { %v835_v45 = vpop.f32.mrf.mxu0 }
 0x1ae   : > { %v836_v46 = vadd.f32 %v3160_v17, %v835_v45  ;;  %v1056_v47 = vpop.f32.mrf.mxu1  ;;  %2511 = vmatmul.mubr.f32.gmra.mxu1 %v944_v43 }
 0x1af   : > { %v1057_v48 = vadd.f32 %v3368_v44, %v1056_v47  ;;  %v2294_v49 = vpop.f32.mrf.mxu0  ;;  %2513 = vmatprep.mubr.msk.f32.mxu1 %vm2766_vm0, %v2765_v1 }
 0x1b0   : > { %v945_v50 = vmax.f32 %v836_v46, 0.0  ;;  %v2368_v51 = vpop.f32.mrf.mxu1 }
 0x1b1   : > { %1363 = vst.msk [vmem:[%s3374_s18 + $0x10] sm:$0xff] %vm1360_vm2, %v1057_v48  ;;  %v840_v52 = vpop.f32.mrf.mxu0 }
 0x1b2   : > { %v841_v53 = vadd.f32 %v3160_v17, %v840_v52  ;;  %v1061_v54 = vpop.f32.mrf.mxu1  ;;  %2514 = vmatmul.mubr.f32.gmra.mxu1 %v945_v50 }
 0x1b3   : > { %v1062_v55 = vadd.f32 %v3368_v44, %v1061_v54  ;;  %v2297_v56 = vpop.f32.mrf.mxu0  ;;  %2516 = vmatprep.mubr.msk.f32.mxu1 %vm2766_vm0, %v2765_v1 }
 0x1b4   : > { %v946_v57 = vmax.f32 %v841_v53, 0.0  ;;  %v2371_v58 = vpop.f32.mrf.mxu1 }
 0x1b5   : > { %1364 = vst.msk [vmem:[%s3374_s18 + $0x18] sm:$0xff] %vm1360_vm2, %v1062_v55  ;;  %v845_v59 = vpop.f32.mrf.mxu0 }
 0x1b6   : > { %v846_v60 = vadd.f32 %v3160_v17, %v845_v59  ;;  %v1066_v61 = vpop.f32.mrf.mxu1  ;;  %2517 = vmatmul.mubr.f32.gmra.mxu1 %v946_v57 }
 0x1b7   : > { %v1067_v62 = vadd.f32 %v3368_v44, %v1066_v61  ;;  %v2300_v63 = vpop.f32.mrf.mxu0  ;;  %2519 = vmatprep.mubr.msk.f32.mxu1 %vm2766_vm0, %v2765_v1 }
 0x1b8   : > { %v947_v0 = vmax.f32 %v846_v60, 0.0  ;;  %v2374_v2 = vpop.f32.mrf.mxu1 }
 0x1b9   : > { %1365 = vst.msk [vmem:[%s3374_s18 + $0x20] sm:$0xff] %vm1360_vm2, %v1067_v62  ;;  %v850_v3 = vpop.f32.mrf.mxu0 }
 0x1ba   : > { %v851_v4 = vadd.f32 %v3160_v17, %v850_v3  ;;  %v1071_v5 = vpop.f32.mrf.mxu1  ;;  %2520 = vmatmul.mubr.f32.gmra.mxu1 %v947_v0 }
 0x1bb   : > { %v1072_v6 = vadd.f32 %v3368_v44, %v1071_v5  ;;  %v2303_v7 = vpop.f32.mrf.mxu0  ;;  %2522 = vmatprep.mubr.msk.f32.mxu1 %vm2766_vm0, %v2765_v1 }
 0x1bc   : > { %v948_v8 = vmax.f32 %v851_v4, 0.0  ;;  %v2377_v9 = vpop.f32.mrf.mxu1 }
 0x1bd   : > { %1366 = vst.msk [vmem:[%s3374_s18 + $0x28] sm:$0xff] %vm1360_vm2, %v1072_v6  ;;  %v855_v10 = vpop.f32.mrf.mxu0 }
 0x1be   : > { %v856_v12 = vadd.f32 %v3160_v17, %v855_v10  ;;  %v1076_v13 = vpop.f32.mrf.mxu1  ;;  %2523 = vmatmul.mubr.f32.gmra.mxu1 %v948_v8 }
 0x1bf   : > { %v1077_v15 = vadd.f32 %v3368_v44, %v1076_v13  ;;  %v2306_v16 = vpop.f32.mrf.mxu0  ;;  %2525 = vmatprep.mubr.msk.f32.mxu1 %vm2766_vm0, %v2765_v1 }
 0x1c0   : > { %v949_v18 = vmax.f32 %v856_v12, 0.0  ;;  %v2380_v19 = vpop.f32.mrf.mxu1 }
 0x1c1   : > { %1367 = vst.msk [vmem:[%s3374_s18 + $0x30] sm:$0xff] %vm1360_vm2, %v1077_v15  ;;  %v860_v20 = vpop.f32.mrf.mxu0 }
 0x1c2   : > { %v861_v21 = vadd.f32 %v3160_v17, %v860_v20  ;;  %v1081_v22 = vpop.f32.mrf.mxu1  ;;  %2526 = vmatmul.mubr.f32.gmra.mxu1 %v949_v18 }
 0x1c3   : > { %v1082_v23 = vadd.f32 %v3368_v44, %v1081_v22  ;;  %v2309_v11 = vpop.f32.mrf.mxu0  ;;  %2528 = vmatprep.mubr.msk.f32.mxu1 %vm2766_vm0, %v2765_v1 }
 0x1c4   : > { %v950_v24 = vmax.f32 %v861_v21, 0.0  ;;  %v2383_v25 = vpop.f32.mrf.mxu1 }
 0x1c5   : > { %1368 = vst.msk [vmem:[%s3374_s18 + $0x38] sm:$0xff] %vm1360_vm2, %v1082_v23  ;;  %v865_v26 = vpop.f32.mrf.mxu0 }
 0x1c6   : > { %v866_v27 = vadd.f32 %v3160_v17, %v865_v26  ;;  %v1086_v28 = vpop.f32.mrf.mxu1  ;;  %2529 = vmatmul.mubr.f32.gmra.mxu1 %v950_v24 }
 0x1c7   : > { %v1087_v14 = vadd.f32 %v3368_v44, %v1086_v28  ;;  %v2312_v29 = vpop.f32.mrf.mxu0  ;;  %2531 = vmatprep.mubr.msk.f32.mxu1 %vm2766_vm0, %v2765_v1 }
 0x1c8   : > { %v951_v30 = vmax.f32 %v866_v27, 0.0  ;;  %v2386_v31 = vpop.f32.mrf.mxu1 }
 0x1c9   : > { %1369 = vst.msk [vmem:[%s3374_s18 + $0x40] sm:$0xff] %vm1360_vm2, %v1087_v14  ;;  %v870_v32 = vpop.f32.mrf.mxu0 }
 0x1ca   : > { %v871_v33 = vadd.f32 %v3160_v17, %v870_v32  ;;  %v1091_v34 = vpop.f32.mrf.mxu1  ;;  %2532 = vmatmul.mubr.f32.gmra.mxu1 %v951_v30 }
 0x1cb   : > { %v1092_v35 = vadd.f32 %v3368_v44, %v1091_v34  ;;  %v2315_v36 = vpop.f32.mrf.mxu0  ;;  %2534 = vmatprep.mubr.msk.f32.mxu1 %vm2766_vm0, %v2765_v1 }
 0x1cc   : > { %v952_v37 = vmax.f32 %v871_v33, 0.0  ;;  %v2389_v38 = vpop.f32.mrf.mxu1 }
 0x1cd   : > { %1370 = vst.msk [vmem:[%s3374_s18 + $0x48] sm:$0xff] %vm1360_vm2, %v1092_v35  ;;  %v875_v39 = vpop.f32.mrf.mxu0 }
 0x1ce   : > { %v876_v40 = vadd.f32 %v3160_v17, %v875_v39  ;;  %v1096_v41 = vpop.f32.mrf.mxu1  ;;  %2535 = vmatmul.mubr.f32.gmra.mxu1 %v952_v37 }
 0x1cf   : > { %v1097_v42 = vadd.f32 %v3368_v44, %v1096_v41  ;;  %v2318_v43 = vpop.f32.mrf.mxu0  ;;  %2537 = vmatprep.mubr.msk.f32.mxu1 %vm2766_vm0, %v2765_v1 }
 0x1d0   : > { %v953_v45 = vmax.f32 %v876_v40, 0.0  ;;  %v2392_v46 = vpop.f32.mrf.mxu1 }
 0x1d1   : > { %1371 = vst.msk [vmem:[%s3374_s18 + $0x50] sm:$0xff] %vm1360_vm2, %v1097_v42  ;;  %v880_v47 = vpop.f32.mrf.mxu0 }
 0x1d2   : > { %v881_v48 = vadd.f32 %v3160_v17, %v880_v47  ;;  %v1101_v49 = vpop.f32.mrf.mxu1  ;;  %2538 = vmatmul.mubr.f32.gmra.mxu1 %v953_v45 }
 0x1d3   : > { %v1102_v50 = vadd.f32 %v3368_v44, %v1101_v49  ;;  %v2321_v51 = vpop.f32.mrf.mxu0  ;;  %2540 = vmatprep.mubr.msk.f32.mxu1 %vm2766_vm0, %v2765_v1 }
 0x1d4   : > { %v954_v52 = vmax.f32 %v881_v48, 0.0  ;;  %v2395_v53 = vpop.f32.mrf.mxu1 }
 0x1d5   : > { %1372 = vst.msk [vmem:[%s3374_s18 + $0x58] sm:$0xff] %vm1360_vm2, %v1102_v50  ;;  %v885_v54 = vpop.f32.mrf.mxu0 }
 0x1d6   : > { %v886_v55 = vadd.f32 %v3160_v17, %v885_v54  ;;  %v1106_v56 = vpop.f32.mrf.mxu1  ;;  %2541 = vmatmul.mubr.f32.gmra.mxu1 %v954_v52 }
 0x1d7   : > { %v1107_v57 = vadd.f32 %v3368_v44, %v1106_v56  ;;  %v2324_v58 = vpop.f32.mrf.mxu0  ;;  %2543 = vmatprep.mubr.msk.f32.mxu1 %vm2766_vm0, %v2765_v1 }
 0x1d8   : > { %v955_v59 = vmax.f32 %v886_v55, 0.0  ;;  %v2398_v60 = vpop.f32.mrf.mxu1 }
 0x1d9   : > { %1373 = vst.msk [vmem:[%s3374_s18 + $0x60] sm:$0xff] %vm1360_vm2, %v1107_v57  ;;  %v890_v61 = vpop.f32.mrf.mxu0 }
 0x1da   : > { %v891_v62 = vadd.f32 %v3160_v17, %v890_v61  ;;  %v1111_v63 = vpop.f32.mrf.mxu1  ;;  %2544 = vmatmul.mubr.f32.gmra.mxu1 %v955_v59 }
 0x1db   : > { %v1112_v0 = vadd.f32 %v3368_v44, %v1111_v63  ;;  %v2327_v2 = vpop.f32.mrf.mxu0  ;;  %2546 = vmatprep.mubr.msk.f32.mxu1 %vm2766_vm0, %v2765_v1 }
 0x1dc   : > { %v956_v3 = vmax.f32 %v891_v62, 0.0  ;;  %v2401_v4 = vpop.f32.mrf.mxu1 }
 0x1dd   : > { %1374 = vst.msk [vmem:[%s3374_s18 + $0x68] sm:$0xff] %vm1360_vm2, %v1112_v0  ;;  %v1046_v5 = vpop.f32.mrf.mxu0 }
 0x1de   : > { %v1047_v6 = vadd.f32 %v3368_v44, %v1046_v5  ;;  %v1116_v7 = vpop.f32.mrf.mxu1  ;;  %2547 = vmatmul.mubr.f32.gmra.mxu1 %v956_v3 }
 0x1df   : > { %v1117_v17 = vadd.f32 %v3368_v44, %v1116_v7  ;;  %v2362_v8 = vpop.f32.mrf.mxu0 }
 0x1e0   : > { %1361 = vst.msk [vmem:[%s3374_s18] sm:$0xff] %vm1360_vm2, %v1047_v6  ;;  %v2404_v9 = vpop.f32.mrf.mxu1 }
 0x1e1   : > { %1375 = vst.msk [vmem:[%s3374_s18 + $0x70] sm:$0xff] %vm1360_vm2, %v1117_v17  ;;  %v1051_v1 = vpop.f32.mrf.mxu0 }
 0x1e2   : > { %v1052_v10 = vadd.f32 %v3368_v44, %v1051_v1  ;;  %v1121_v12 = vpop.f32.mrf.mxu1 }
 0x1e3   : > { %v1122_v13 = vadd.f32 %v3368_v44, %v1121_v12  ;;  %v2365_v15 = vpop.f32.mrf.mxu0 }
 0x1e4   : > { %1362 = vst.msk [vmem:[%s3374_s18 + $0x8] sm:$0xff] %vm1360_vm2, %v1052_v10  ;;  %v2407_v16 = vpop.f32.mrf.mxu1 }
 0x1e5   : > { %1376 = vst.msk [vmem:[%s3374_s18 + $0x78] sm:$0xff] %vm1360_vm2, %v1122_v13 }
 0x1e6   : > { %v1126_v18 = vpop.f32.mrf.mxu1 }
 0x1e7   : > { %v1127_v19 = vadd.f32 %v3368_v44, %v1126_v18 }
 0x1e8   : > { %v2410_v20 = vpop.f32.mrf.mxu1 }
 0x1e9   : > { %1377 = vst.msk [vmem:[%s3374_s18 + $0x80] sm:$0xff] %vm1360_vm2, %v1127_v19 }
 0x1ea   : > { %v1131_v21 = vpop.f32.mrf.mxu1 }
 0x1eb   : > { %v1132_v22 = vadd.f32 %v3368_v44, %v1131_v21 }
 0x1ec   : > { %v2413_v23 = vpop.f32.mrf.mxu1 }
 0x1ed   : > { %1378 = vst.msk [vmem:[%s3374_s18 + $0x88] sm:$0xff] %vm1360_vm2, %v1132_v22 }
 0x1ee   : > { %v1136_v11 = vpop.f32.mrf.mxu1 }
 0x1ef   : > { %v1137_v24 = vadd.f32 %v3368_v44, %v1136_v11 }
 0x1f0   : > { %v2416_v25 = vpop.f32.mrf.mxu1 }
 0x1f1   : > { %1379 = vst.msk [vmem:[%s3374_s18 + $0x90] sm:$0xff] %vm1360_vm2, %v1137_v24 }
 0x1f2   : > { %v1141_v26 = vpop.f32.mrf.mxu1 }
 0x1f3   : > { %v1142_v27 = vadd.f32 %v3368_v44, %v1141_v26 }
 0x1f4   : > { %v2419_v28 = vpop.f32.mrf.mxu1 }
 0x1f5   : > { %1380 = vst.msk [vmem:[%s3374_s18 + $0x98] sm:$0xff] %vm1360_vm2, %v1142_v27 }
 0x1f6   : > { %v1146_v14 = vpop.f32.mrf.mxu1 }
 0x1f7   : > { %v1147_v29 = vadd.f32 %v3368_v44, %v1146_v14 }
 0x1f8   : > { %v2422_v30 = vpop.f32.mrf.mxu1 }
 0x1f9   : > { %1381 = vst.msk [vmem:[%s3374_s18 + $0xa0] sm:$0xff] %vm1360_vm2, %v1147_v29 }
 0x1fa   : > { %v1151_v31 = vpop.f32.mrf.mxu1 }
 0x1fb   : > { %v1152_v32 = vadd.f32 %v3368_v44, %v1151_v31 }
 0x1fc   : > { %v2425_v33 = vpop.f32.mrf.mxu1 }
 0x1fd   : > { %1382 = vst.msk [vmem:[%s3374_s18 + $0xa8] sm:$0xff] %vm1360_vm2, %v1152_v32 }
 0x1fe   : > { %v1156_v34 = vpop.f32.mrf.mxu1 }
 0x1ff   : > { %v1157_v35 = vadd.f32 %v3368_v44, %v1156_v34 }
 0x200   : > { %v2428_v36 = vpop.f32.mrf.mxu1 }
 0x201   : > { %1383 = vst.msk [vmem:[%s3374_s18 + $0xb0] sm:$0xff] %vm1360_vm2, %v1157_v35 }
 0x202   : > { %v1161_v37 = vpop.f32.mrf.mxu1 }
 0x203   : > { %v1162_v38 = vadd.f32 %v3368_v44, %v1161_v37 }
 0x204   : > { %v2431_v39 = vpop.f32.mrf.mxu1 }
 0x205   : > { %1384 = vst.msk [vmem:[%s3374_s18 + $0xb8] sm:$0xff] %vm1360_vm2, %v1162_v38 }
 0x206   : > { %v1166_v40 = vpop.f32.mrf.mxu1 }
 0x207   : > { %v1167_v41 = vadd.f32 %v3368_v44, %v1166_v40 }
 0x208   : > { %v2434_v42 = vpop.f32.mrf.mxu1 }
 0x209   : > { %1385 = vst.msk [vmem:[%s3374_s18 + $0xc0] sm:$0xff] %vm1360_vm2, %v1167_v41 }
 0x20a   : > { %v1171_v43 = vpop.f32.mrf.mxu1 }
 0x20b   : > { %v1172_v45 = vadd.f32 %v3368_v44, %v1171_v43 }
 0x20c   : > { %v2437_v46 = vpop.f32.mrf.mxu1 }
 0x20d   : > { %1386 = vst.msk [vmem:[%s3374_s18 + $0xc8] sm:$0xff] %vm1360_vm2, %v1172_v45 }
 0x20e   : > { %v1176_v47 = vpop.f32.mrf.mxu1 }
 0x20f   : > { %v1177_v48 = vadd.f32 %v3368_v44, %v1176_v47 }
 0x210   : > { %v2440_v49 = vpop.f32.mrf.mxu1 }
 0x211   : > { %1387 = vst.msk [vmem:[%s3374_s18 + $0xd0] sm:$0xff] %vm1360_vm2, %v1177_v48 }
 0x212   : > { %v1181_v50 = vpop.f32.mrf.mxu1 }
 0x213   : > { %v1182_v51 = vadd.f32 %v3368_v44, %v1181_v50 }
 0x214   : > { %v2443_v52 = vpop.f32.mrf.mxu1 }
 0x215   : > { %1388 = vst.msk [vmem:[%s3374_s18 + $0xd8] sm:$0xff] %vm1360_vm2, %v1182_v51 }
 0x216   : > { %v1186_v53 = vpop.f32.mrf.mxu1 }
 0x217   : > { %v1187_v54 = vadd.f32 %v3368_v44, %v1186_v53 }
 0x218   : > { %v2446_v55 = vpop.f32.mrf.mxu1 }
 0x219   : > { %1389 = vst.msk [vmem:[%s3374_s18 + $0xe0] sm:$0xff] %vm1360_vm2, %v1187_v54 }
 0x21a   : > { %v1191_v56 = vpop.f32.mrf.mxu1 }
 0x21b   : > { %v1192_v57 = vadd.f32 %v3368_v44, %v1191_v56 }
 0x21c   : > { %v2449_v58 = vpop.f32.mrf.mxu1 }
 0x21d   : > { %1390 = vst.msk [vmem:[%s3374_s18 + $0xe8] sm:$0xff] %vm1360_vm2, %v1192_v57 }
 0x21e   : > { %v1196_v59 = vpop.f32.mrf.mxu1 }
 0x21f   : > { %v1197_v60 = vadd.f32 %v3368_v44, %v1196_v59 }
 0x220   : > { %v2452_v61 = vpop.f32.mrf.mxu1 }
 0x221   : > { %1391 = vst.msk [vmem:[%s3374_s18 + $0xf0] sm:$0xff] %vm1360_vm2, %v1197_v60 }
 0x222   : > { %v1201_v62 = vpop.f32.mrf.mxu1 }
 0x223   : > { %v1202_v63 = vadd.f32 %v3368_v44, %v1201_v62 }
 0x224   : > { %v2455_v0 = vpop.f32.mrf.mxu1 }
 0x225   : > { %1392 = vst.msk [vmem:[%s3374_s18 + $0xf8] sm:$0xff] %vm1360_vm2, %v1202_v63 }
 0x226   : > { %v1206_v2 = vpop.f32.mrf.mxu1 }
 0x227   : > { %v1207_v3 = vadd.f32 %v3368_v44, %v1206_v2 }
 0x228   : > { %v2458_v4 = vpop.f32.mrf.mxu1 }
 0x229   : > { %1393 = vst.msk [vmem:[%s3374_s18 + $0x100] sm:$0xff] %vm1360_vm2, %v1207_v3 }
 0x22a   : > { %v1211_v5 = vpop.f32.mrf.mxu1 }
 0x22b   : > { %v1212_v6 = vadd.f32 %v3368_v44, %v1211_v5 }
 0x22c   : > { %v2461_v7 = vpop.f32.mrf.mxu1 }
 0x22d   : > { %1394 = vst.msk [vmem:[%s3374_s18 + $0x108] sm:$0xff] %vm1360_vm2, %v1212_v6 }
 0x22e   : > { %v1216_v17 = vpop.f32.mrf.mxu1 }
 0x22f   : > { %v1217_v8 = vadd.f32 %v3368_v44, %v1216_v17 }
 0x230   : > { %v2464_v9 = vpop.f32.mrf.mxu1 }
 0x231   : > { %1395 = vst.msk [vmem:[%s3374_s18 + $0x110] sm:$0xff] %vm1360_vm2, %v1217_v8 }
 0x232   : > { %v1221_v1 = vpop.f32.mrf.mxu1 }
 0x233   : > { %v1222_v10 = vadd.f32 %v3368_v44, %v1221_v1 }
 0x234   : > { %v2467_v12 = vpop.f32.mrf.mxu1 }
 0x235   : > { %1396 = vst.msk [vmem:[%s3374_s18 + $0x118] sm:$0xff] %vm1360_vm2, %v1222_v10 }
 0x236   : > { %v1226_v13 = vpop.f32.mrf.mxu1 }
 0x237   : > { %v1227_v15 = vadd.f32 %v3368_v44, %v1226_v13 }
 0x238   : > { %v2470_v16 = vpop.f32.mrf.mxu1 }
 0x239   : > { %1397 = vst.msk [vmem:[%s3374_s18 + $0x120] sm:$0xff] %vm1360_vm2, %v1227_v15 }
 0x23a   : > { %v1231_v18 = vpop.f32.mrf.mxu1 }
 0x23b   : > { %v1232_v19 = vadd.f32 %v3368_v44, %v1231_v18 }
 0x23c   : > { %v2473_v20 = vpop.f32.mrf.mxu1 }
 0x23d   : > { %1398 = vst.msk [vmem:[%s3374_s18 + $0x128] sm:$0xff] %vm1360_vm2, %v1232_v19 }
 0x23e   : > { %v1236_v21 = vpop.f32.mrf.mxu1 }
 0x23f   : > { %v1237_v22 = vadd.f32 %v3368_v44, %v1236_v21 }
 0x240   : > { %v2476_v23 = vpop.f32.mrf.mxu1 }
 0x241   : > { %1399 = vst.msk [vmem:[%s3374_s18 + $0x130] sm:$0xff] %vm1360_vm2, %v1237_v22 }
 0x242   : > { %v1241_v11 = vpop.f32.mrf.mxu1 }
 0x243   : > { %v1242_v24 = vadd.f32 %v3368_v44, %v1241_v11 }
 0x244   : > { %v2479_v25 = vpop.f32.mrf.mxu1 }
 0x245   : > { %1400 = vst.msk [vmem:[%s3374_s18 + $0x138] sm:$0xff] %vm1360_vm2, %v1242_v24 }
 0x246   : > { %v1246_v26 = vpop.f32.mrf.mxu1 }
 0x247   : > { %v1247_v27 = vadd.f32 %v3368_v44, %v1246_v26 }
 0x248   : > { %v2482_v28 = vpop.f32.mrf.mxu1 }
 0x249   : > { %1401 = vst.msk [vmem:[%s3374_s18 + $0x140] sm:$0xff] %vm1360_vm2, %v1247_v27 }
 0x24a   : > { %v1251_v14 = vpop.f32.mrf.mxu1 }
 0x24b   : > { %v1252_v29 = vadd.f32 %v3368_v44, %v1251_v14 }
 0x24c   : > { %v2485_v30 = vpop.f32.mrf.mxu1 }
 0x24d   : > { %1402 = vst.msk [vmem:[%s3374_s18 + $0x148] sm:$0xff] %vm1360_vm2, %v1252_v29 }
 0x24e   : > { %v1256_v31 = vpop.f32.mrf.mxu1 }
 0x24f   : > { %v1257_v32 = vadd.f32 %v3368_v44, %v1256_v31 }
 0x250   : > { %v2488_v33 = vpop.f32.mrf.mxu1 }
 0x251   : > { %1403 = vst.msk [vmem:[%s3374_s18 + $0x150] sm:$0xff] %vm1360_vm2, %v1257_v32 }
 0x252   : > { %v1261_v34 = vpop.f32.mrf.mxu1 }
 0x253   : > { %v1262_v35 = vadd.f32 %v3368_v44, %v1261_v34 }
 0x254   : > { %v2491_v36 = vpop.f32.mrf.mxu1 }
 0x255   : > { %1404 = vst.msk [vmem:[%s3374_s18 + $0x158] sm:$0xff] %vm1360_vm2, %v1262_v35 }
 0x256   : > { %v1266_v37 = vpop.f32.mrf.mxu1 }
 0x257   : > { %v1267_v38 = vadd.f32 %v3368_v44, %v1266_v37 }
 0x258   : > { %v2494_v39 = vpop.f32.mrf.mxu1 }
 0x259   : > { %1405 = vst.msk [vmem:[%s3374_s18 + $0x160] sm:$0xff] %vm1360_vm2, %v1267_v38 }
 0x25a   : > { %v1271_v40 = vpop.f32.mrf.mxu1 }
 0x25b   : > { %v1272_v41 = vadd.f32 %v3368_v44, %v1271_v40 }
 0x25c   : > { %v2497_v42 = vpop.f32.mrf.mxu1 }
 0x25d   : > { %1406 = vst.msk [vmem:[%s3374_s18 + $0x168] sm:$0xff] %vm1360_vm2, %v1272_v41 }
 0x25e   : > { %v1276_v43 = vpop.f32.mrf.mxu1 }
 0x25f   : > { %v1277_v45 = vadd.f32 %v3368_v44, %v1276_v43 }
 0x260   : > { %v2500_v46 = vpop.f32.mrf.mxu1 }
 0x261   : > { %1407 = vst.msk [vmem:[%s3374_s18 + $0x170] sm:$0xff] %vm1360_vm2, %v1277_v45 }
 0x262   : > { %v1281_v47 = vpop.f32.mrf.mxu1 }
 0x263   : > { %v1282_v48 = vadd.f32 %v3368_v44, %v1281_v47 }
 0x264   : > { %v2503_v49 = vpop.f32.mrf.mxu1 }
 0x265   : > { %1408 = vst.msk [vmem:[%s3374_s18 + $0x178] sm:$0xff] %vm1360_vm2, %v1282_v48 }
 0x266   : > { %v1286_v50 = vpop.f32.mrf.mxu1 }
 0x267   : > { %v1287_v51 = vadd.f32 %v3368_v44, %v1286_v50 }
 0x268   : > { %v2506_v52 = vpop.f32.mrf.mxu1 }
 0x269   : > { %1409 = vst.msk [vmem:[%s3374_s18 + $0x180] sm:$0xff] %vm1360_vm2, %v1287_v51 }
 0x26a   : > { %v1291_v53 = vpop.f32.mrf.mxu1 }
 0x26b   : > { %v1292_v54 = vadd.f32 %v3368_v44, %v1291_v53 }
 0x26c   : > { %v2509_v55 = vpop.f32.mrf.mxu1 }
 0x26d   : > { %1410 = vst.msk [vmem:[%s3374_s18 + $0x188] sm:$0xff] %vm1360_vm2, %v1292_v54 }
 0x26e   : > { %v1296_v56 = vpop.f32.mrf.mxu1 }
 0x26f   : > { %v1297_v57 = vadd.f32 %v3368_v44, %v1296_v56 }
 0x270   : > { %v2512_v58 = vpop.f32.mrf.mxu1 }
 0x271   : > { %1411 = vst.msk [vmem:[%s3374_s18 + $0x190] sm:$0xff] %vm1360_vm2, %v1297_v57 }
 0x272   : > { %v1301_v59 = vpop.f32.mrf.mxu1 }
 0x273   : > { %v1302_v60 = vadd.f32 %v3368_v44, %v1301_v59 }
 0x274   : > { %v2515_v61 = vpop.f32.mrf.mxu1 }
 0x275   : > { %1412 = vst.msk [vmem:[%s3374_s18 + $0x198] sm:$0xff] %vm1360_vm2, %v1302_v60 }
 0x276   : > { %v1306_v62 = vpop.f32.mrf.mxu1 }
 0x277   : > { %v1307_v63 = vadd.f32 %v3368_v44, %v1306_v62 }
 0x278   : > { %v2518_v0 = vpop.f32.mrf.mxu1 }
 0x279   : > { %1413 = vst.msk [vmem:[%s3374_s18 + $0x1a0] sm:$0xff] %vm1360_vm2, %v1307_v63 }
 0x27a   : > { %v1311_v2 = vpop.f32.mrf.mxu1 }
 0x27b   : > { %v1312_v3 = vadd.f32 %v3368_v44, %v1311_v2 }
 0x27c   : > { %v2521_v4 = vpop.f32.mrf.mxu1 }
 0x27d   : > { %1414 = vst.msk [vmem:[%s3374_s18 + $0x1a8] sm:$0xff] %vm1360_vm2, %v1312_v3 }
 0x27e   : > { %v1316_v5 = vpop.f32.mrf.mxu1 }
 0x27f   : > { %v1317_v6 = vadd.f32 %v3368_v44, %v1316_v5 }
 0x280   : > { %v2524_v7 = vpop.f32.mrf.mxu1 }
 0x281   : > { %1415 = vst.msk [vmem:[%s3374_s18 + $0x1b0] sm:$0xff] %vm1360_vm2, %v1317_v6 }
 0x282   : > { %v1321_v17 = vpop.f32.mrf.mxu1 }
 0x283   : > { %v1322_v8 = vadd.f32 %v3368_v44, %v1321_v17 }
 0x284   : > { %v2527_v9 = vpop.f32.mrf.mxu1 }
 0x285   : > { %1416 = vst.msk [vmem:[%s3374_s18 + $0x1b8] sm:$0xff] %vm1360_vm2, %v1322_v8 }
 0x286   : > { %v1326_v1 = vpop.f32.mrf.mxu1 }
 0x287   : > { %v1327_v10 = vadd.f32 %v3368_v44, %v1326_v1 }
 0x288   : > { %v2530_v12 = vpop.f32.mrf.mxu1 }
 0x289   : > { %1417 = vst.msk [vmem:[%s3374_s18 + $0x1c0] sm:$0xff] %vm1360_vm2, %v1327_v10 }
 0x28a   : > { %v1331_v13 = vpop.f32.mrf.mxu1 }
 0x28b   : > { %v1332_v15 = vadd.f32 %v3368_v44, %v1331_v13 }
 0x28c   : > { %v2533_v16 = vpop.f32.mrf.mxu1 }
 0x28d   : > { %1418 = vst.msk [vmem:[%s3374_s18 + $0x1c8] sm:$0xff] %vm1360_vm2, %v1332_v15 }
 0x28e   : > { %v1336_v18 = vpop.f32.mrf.mxu1 }
 0x28f   : > { %v1337_v19 = vadd.f32 %v3368_v44, %v1336_v18 }
 0x290   : > { %v2536_v20 = vpop.f32.mrf.mxu1 }
 0x291   : > { %1419 = vst.msk [vmem:[%s3374_s18 + $0x1d0] sm:$0xff] %vm1360_vm2, %v1337_v19 }
 0x292   : > { %v1341_v21 = vpop.f32.mrf.mxu1 }
 0x293   : > { %v1342_v22 = vadd.f32 %v3368_v44, %v1341_v21 }
 0x294   : > { %v2539_v23 = vpop.f32.mrf.mxu1 }
 0x295   : > { %1420 = vst.msk [vmem:[%s3374_s18 + $0x1d8] sm:$0xff] %vm1360_vm2, %v1342_v22 }
 0x296   : > { %v1346_v11 = vpop.f32.mrf.mxu1 }
 0x297   : > { %v1347_v24 = vadd.f32 %v3368_v44, %v1346_v11 }
 0x298   : > { %v2542_v25 = vpop.f32.mrf.mxu1 }
 0x299   : > { %1421 = vst.msk [vmem:[%s3374_s18 + $0x1e0] sm:$0xff] %vm1360_vm2, %v1347_v24 }
 0x29a   : > { %v1351_v26 = vpop.f32.mrf.mxu1 }
 0x29b   : > { %v1352_v27 = vadd.f32 %v3368_v44, %v1351_v26 }
 0x29c   : > { %v2545_v28 = vpop.f32.mrf.mxu1 }
 0x29d   : > { %1422 = vst.msk [vmem:[%s3374_s18 + $0x1e8] sm:$0xff] %vm1360_vm2, %v1352_v27  ;;  %1430 = sbr.rel (!%p2822_p4) target bundleno = 752 (0x2f0), region = 44 }
 0x29e   : > { %v1356_v14 = vpop.f32.mrf.mxu1 }
 0x29f   : > { %v1357_v29 = vadd.f32 %v3368_v44, %v1356_v14 }
 0x2a0   : > { %v2548_v30 = vpop.f32.mrf.mxu1 }
 0x2a1   : > { %1423 = vst.msk [vmem:[%s3374_s18 + $0x1f0] sm:$0xff] %vm1360_vm2, %v1357_v29 }
 0x2a2   : > { %s3812_s9 = smov (!%p1433_p8, %s1432_s9), 63 }
 0x2a3   : > { %s1960_s14 = sshll.u32 %s3812_s9, 7 }
 0x2a4   : > { %p1963_p9 = scmp.eq.s32.totalorder %s1960_s14, 0 }
 0x2a5   : > { %2673 = sdivrem.u32 (!%p1963_p9), %s3812_s9, 63 }
 0x2a6   : > { %1441 = sbr.rel (%p1963_p9) target bundleno = 752 (0x2f0), region = 48 }
 0x2ae   : > { %s3610_s26 = spop.drf %2673 }
 0x2af   : > { %p1964_p10 = scmp.le.s32.totalorder %s3610_s26, 0 }
 0x2b0   : > { %s3803_s21 = smov (!%p1964_p10), %s3604_s13  ;;  %s3804_s29 = smov (!%p1964_p10), %s3374_s18 }
 0x2b1   : > { %1846 = sbr.rel (%p1964_p10) target bundleno = 727 (0x2d7), region = 124  ;;  %s3619_s15 = smov (!%p1964_p10), 0  }
 0x2b2   : > { %s3621_s16 = smov (!%p1964_p10), 0  }
 0x2b6 LB: >> { %v1630_v44 = vld [vmem:[%s2739_s29] sm:$0xff]  ;;  %v1632_v31 = vld [vmem:[%s2739_s29 + $0x8] sm:$0xff]  ;;  %v1634_v32 = vld [vmem:[%s2739_s29 + $0x10] sm:$0xff]  ;;  %s1756_s17 = sadd.s32 1, %s2743_s15  ;;  %s1624_s16 = sadd.s32 1, %s2747_s16   ;;  %s2747_s16 = sphi %s3621_s16, %s1624_s16   ;;  %s2743_s15 = sphi %s3619_s15, %s3807_s15   ;;  %s2739_s29 = sphi %s3804_s29, %s3806_s29   ;;  %s2735_s21 = sphi %s3803_s21, %s3805_s21  }
 0x2b7   : >> { %1631 = vst [vmem:[%s2735_s21] sm:$0xff] %v1630_v44  ;;  %1633 = vst [vmem:[%s2735_s21 + $0x8] sm:$0xff] %v1632_v31  ;;  %v1636_v33 = vld [vmem:[%s2739_s29 + $0x18] sm:$0xff]  ;;  %v1638_v34 = vld [vmem:[%s2739_s29 + $0x20] sm:$0xff]  ;;  %p1757_p11 = scmp.ge.s32.totalorder %s1756_s17, %s3610_s26  ;;  %p1623_p12 = scmp.ge.s32.totalorder %s1624_s16, %s3610_s26 }
 0x2b8   : >> { %1635 = vst [vmem:[%s2735_s21 + $0x10] sm:$0xff] %v1634_v32  ;;  %v1640_v35 = vld [vmem:[%s2739_s29 + $0x28] sm:$0xff]  ;;  %1637 = vst [vmem:[%s2735_s21 + $0x18] sm:$0xff] %v1636_v33  ;;  %v1642_v36 = vld [vmem:[%s2739_s29 + $0x30] sm:$0xff] }
 0x2b9   : >> { %1639 = vst [vmem:[%s2735_s21 + $0x20] sm:$0xff] %v1638_v34  ;;  %1641 = vst [vmem:[%s2735_s21 + $0x28] sm:$0xff] %v1640_v35  ;;  %v1644_v37 = vld [vmem:[%s2739_s29 + $0x38] sm:$0xff]  ;;  %v1646_v38 = vld [vmem:[%s2739_s29 + $0x40] sm:$0xff]  ;;  %s3814_s17 = smov (%p1757_p11, %s1756_s17), 0 }
 0x2ba   : >> { %1643 = vst [vmem:[%s2735_s21 + $0x30] sm:$0xff] %v1642_v36  ;;  %1645 = vst [vmem:[%s2735_s21 + $0x38] sm:$0xff] %v1644_v37  ;;  %v1648_v39 = vld [vmem:[%s2739_s29 + $0x48] sm:$0xff]  ;;  %v1650_v40 = vld [vmem:[%s2739_s29 + $0x50] sm:$0xff]  ;;  %s1759_s20 = smul.u32 504, %s3814_s17  ;;  %s3807_s15 = smov %s3814_s17 }
 0x2bb   : >> { %1647 = vst [vmem:[%s2735_s21 + $0x40] sm:$0xff] %v1646_v38  ;;  %v1652_v41 = vld [vmem:[%s2739_s29 + $0x58] sm:$0xff]  ;;  %1649 = vst [vmem:[%s2735_s21 + $0x48] sm:$0xff] %v1648_v39  ;;  %v1654_v42 = vld [vmem:[%s2739_s29 + $0x60] sm:$0xff] }
 0x2bc   : >> { %1651 = vst [vmem:[%s2735_s21 + $0x50] sm:$0xff] %v1650_v40  ;;  %1653 = vst [vmem:[%s2735_s21 + $0x58] sm:$0xff] %v1652_v41  ;;  %v1656_v43 = vld [vmem:[%s2739_s29 + $0x68] sm:$0xff]  ;;  %v1658_v45 = vld [vmem:[%s2739_s29 + $0x70] sm:$0xff]  ;;  %s3683_s23 = scalar_lea.vmem %s3374_s18, %s1759_s20 [#allocation2]   ;;  %s3686_s24 = scalar_lea.vmem %s3604_s13, %s1759_s20  }
 0x2bd   : >> { %1655 = vst [vmem:[%s2735_s21 + $0x60] sm:$0xff] %v1654_v42  ;;  %1657 = vst [vmem:[%s2735_s21 + $0x68] sm:$0xff] %v1656_v43  ;;  %v1660_v46 = vld [vmem:[%s2739_s29 + $0x78] sm:$0xff]  ;;  %v1662_v47 = vld [vmem:[%s2739_s29 + $0x80] sm:$0xff] }
 0x2be   : >> { %1659 = vst [vmem:[%s2735_s21 + $0x70] sm:$0xff] %v1658_v45  ;;  %v1664_v48 = vld [vmem:[%s2739_s29 + $0x88] sm:$0xff]  ;;  %1661 = vst [vmem:[%s2735_s21 + $0x78] sm:$0xff] %v1660_v46  ;;  %v1666_v49 = vld [vmem:[%s2739_s29 + $0x90] sm:$0xff] }
 0x2bf   : >> { %1663 = vst [vmem:[%s2735_s21 + $0x80] sm:$0xff] %v1662_v47  ;;  %1665 = vst [vmem:[%s2735_s21 + $0x88] sm:$0xff] %v1664_v48  ;;  %v1668_v50 = vld [vmem:[%s2739_s29 + $0x98] sm:$0xff]  ;;  %v1670_v51 = vld [vmem:[%s2739_s29 + $0xa0] sm:$0xff] }
 0x2c0   : >> { %1667 = vst [vmem:[%s2735_s21 + $0x90] sm:$0xff] %v1666_v49  ;;  %1669 = vst [vmem:[%s2735_s21 + $0x98] sm:$0xff] %v1668_v50  ;;  %v1672_v52 = vld [vmem:[%s2739_s29 + $0xa8] sm:$0xff]  ;;  %v1674_v53 = vld [vmem:[%s2739_s29 + $0xb0] sm:$0xff] }
 0x2c1   : >> { %1671 = vst [vmem:[%s2735_s21 + $0xa0] sm:$0xff] %v1670_v51  ;;  %v1676_v54 = vld [vmem:[%s2739_s29 + $0xb8] sm:$0xff]  ;;  %1673 = vst [vmem:[%s2735_s21 + $0xa8] sm:$0xff] %v1672_v52  ;;  %v1678_v55 = vld [vmem:[%s2739_s29 + $0xc0] sm:$0xff] }
 0x2c2   : >> { %1675 = vst [vmem:[%s2735_s21 + $0xb0] sm:$0xff] %v1674_v53  ;;  %1677 = vst [vmem:[%s2735_s21 + $0xb8] sm:$0xff] %v1676_v54  ;;  %v1680_v56 = vld [vmem:[%s2739_s29 + $0xc8] sm:$0xff]  ;;  %v1682_v57 = vld [vmem:[%s2739_s29 + $0xd0] sm:$0xff] }
 0x2c3   : >> { %1679 = vst [vmem:[%s2735_s21 + $0xc0] sm:$0xff] %v1678_v55  ;;  %1681 = vst [vmem:[%s2735_s21 + $0xc8] sm:$0xff] %v1680_v56  ;;  %v1684_v58 = vld [vmem:[%s2739_s29 + $0xd8] sm:$0xff]  ;;  %v1686_v59 = vld [vmem:[%s2739_s29 + $0xe0] sm:$0xff] }
 0x2c4   : >> { %1683 = vst [vmem:[%s2735_s21 + $0xd0] sm:$0xff] %v1682_v57  ;;  %v1688_v60 = vld [vmem:[%s2739_s29 + $0xe8] sm:$0xff]  ;;  %1685 = vst [vmem:[%s2735_s21 + $0xd8] sm:$0xff] %v1684_v58  ;;  %v1690_v61 = vld [vmem:[%s2739_s29 + $0xf0] sm:$0xff] }
 0x2c5   : >> { %1687 = vst [vmem:[%s2735_s21 + $0xe0] sm:$0xff] %v1686_v59  ;;  %1689 = vst [vmem:[%s2735_s21 + $0xe8] sm:$0xff] %v1688_v60  ;;  %v1692_v62 = vld [vmem:[%s2739_s29 + $0xf8] sm:$0xff]  ;;  %v1694_v63 = vld [vmem:[%s2739_s29 + $0x100] sm:$0xff] }
 0x2c6   : >> { %1691 = vst [vmem:[%s2735_s21 + $0xf0] sm:$0xff] %v1690_v61  ;;  %1693 = vst [vmem:[%s2735_s21 + $0xf8] sm:$0xff] %v1692_v62  ;;  %v1696_v0 = vld [vmem:[%s2739_s29 + $0x108] sm:$0xff]  ;;  %v1698_v2 = vld [vmem:[%s2739_s29 + $0x110] sm:$0xff] }
 0x2c7   : >> { %1695 = vst [vmem:[%s2735_s21 + $0x100] sm:$0xff] %v1694_v63  ;;  %v1700_v3 = vld [vmem:[%s2739_s29 + $0x118] sm:$0xff]  ;;  %1697 = vst [vmem:[%s2735_s21 + $0x108] sm:$0xff] %v1696_v0  ;;  %v1702_v4 = vld [vmem:[%s2739_s29 + $0x120] sm:$0xff] }
 0x2c8   : >> { %1699 = vst [vmem:[%s2735_s21 + $0x110] sm:$0xff] %v1698_v2  ;;  %1701 = vst [vmem:[%s2735_s21 + $0x118] sm:$0xff] %v1700_v3  ;;  %v1704_v5 = vld [vmem:[%s2739_s29 + $0x128] sm:$0xff]  ;;  %v1706_v6 = vld [vmem:[%s2739_s29 + $0x130] sm:$0xff] }
 0x2c9   : >> { %1703 = vst [vmem:[%s2735_s21 + $0x120] sm:$0xff] %v1702_v4  ;;  %1705 = vst [vmem:[%s2735_s21 + $0x128] sm:$0xff] %v1704_v5  ;;  %v1708_v7 = vld [vmem:[%s2739_s29 + $0x138] sm:$0xff]  ;;  %v1710_v17 = vld [vmem:[%s2739_s29 + $0x140] sm:$0xff] }
 0x2ca   : >> { %1707 = vst [vmem:[%s2735_s21 + $0x130] sm:$0xff] %v1706_v6  ;;  %v1712_v8 = vld [vmem:[%s2739_s29 + $0x148] sm:$0xff]  ;;  %1709 = vst [vmem:[%s2735_s21 + $0x138] sm:$0xff] %v1708_v7  ;;  %v1714_v9 = vld [vmem:[%s2739_s29 + $0x150] sm:$0xff] }
 0x2cb   : >> { %1711 = vst [vmem:[%s2735_s21 + $0x140] sm:$0xff] %v1710_v17  ;;  %1713 = vst [vmem:[%s2735_s21 + $0x148] sm:$0xff] %v1712_v8  ;;  %v1716_v1 = vld [vmem:[%s2739_s29 + $0x158] sm:$0xff]  ;;  %v1718_v10 = vld [vmem:[%s2739_s29 + $0x160] sm:$0xff] }
 0x2cc   : >> { %1715 = vst [vmem:[%s2735_s21 + $0x150] sm:$0xff] %v1714_v9  ;;  %1717 = vst [vmem:[%s2735_s21 + $0x158] sm:$0xff] %v1716_v1  ;;  %v1720_v12 = vld [vmem:[%s2739_s29 + $0x168] sm:$0xff]  ;;  %v1722_v13 = vld [vmem:[%s2739_s29 + $0x170] sm:$0xff] }
 0x2cd   : >> { %1719 = vst [vmem:[%s2735_s21 + $0x160] sm:$0xff] %v1718_v10  ;;  %v1724_v15 = vld [vmem:[%s2739_s29 + $0x178] sm:$0xff]  ;;  %1721 = vst [vmem:[%s2735_s21 + $0x168] sm:$0xff] %v1720_v12  ;;  %v1726_v16 = vld [vmem:[%s2739_s29 + $0x180] sm:$0xff] }
 0x2ce   : >> { %1723 = vst [vmem:[%s2735_s21 + $0x170] sm:$0xff] %v1722_v13  ;;  %1725 = vst [vmem:[%s2735_s21 + $0x178] sm:$0xff] %v1724_v15  ;;  %v1728_v18 = vld [vmem:[%s2739_s29 + $0x188] sm:$0xff]  ;;  %v1730_v19 = vld [vmem:[%s2739_s29 + $0x190] sm:$0xff] }
 0x2cf   : >> { %1727 = vst [vmem:[%s2735_s21 + $0x180] sm:$0xff] %v1726_v16  ;;  %1729 = vst [vmem:[%s2735_s21 + $0x188] sm:$0xff] %v1728_v18  ;;  %v1732_v20 = vld [vmem:[%s2739_s29 + $0x198] sm:$0xff]  ;;  %v1734_v21 = vld [vmem:[%s2739_s29 + $0x1a0] sm:$0xff] }
 0x2d0   : >> { %1731 = vst [vmem:[%s2735_s21 + $0x190] sm:$0xff] %v1730_v19  ;;  %v1736_v22 = vld [vmem:[%s2739_s29 + $0x1a8] sm:$0xff]  ;;  %1733 = vst [vmem:[%s2735_s21 + $0x198] sm:$0xff] %v1732_v20  ;;  %v1738_v23 = vld [vmem:[%s2739_s29 + $0x1b0] sm:$0xff] }
 0x2d1   : >> { %1735 = vst [vmem:[%s2735_s21 + $0x1a0] sm:$0xff] %v1734_v21  ;;  %1737 = vst [vmem:[%s2735_s21 + $0x1a8] sm:$0xff] %v1736_v22  ;;  %v1740_v11 = vld [vmem:[%s2739_s29 + $0x1b8] sm:$0xff]  ;;  %v1742_v24 = vld [vmem:[%s2739_s29 + $0x1c0] sm:$0xff] }
 0x2d2   : >> { %1739 = vst [vmem:[%s2735_s21 + $0x1b0] sm:$0xff] %v1738_v23  ;;  %1741 = vst [vmem:[%s2735_s21 + $0x1b8] sm:$0xff] %v1740_v11  ;;  %v1744_v25 = vld [vmem:[%s2739_s29 + $0x1c8] sm:$0xff]  ;;  %v1746_v26 = vld [vmem:[%s2739_s29 + $0x1d0] sm:$0xff]  ;;  %1626 = sbr.rel (!%p1623_p12) target bundleno = 694 (0x2b6), region = 130 }
 0x2d3   : >> { %1743 = vst [vmem:[%s2735_s21 + $0x1c0] sm:$0xff] %v1742_v24  ;;  %v1748_v27 = vld [vmem:[%s2739_s29 + $0x1d8] sm:$0xff]  ;;  %1745 = vst [vmem:[%s2735_s21 + $0x1c8] sm:$0xff] %v1744_v25  ;;  %v1750_v28 = vld [vmem:[%s2739_s29 + $0x1e0] sm:$0xff] }
 0x2d4   : >> { %1747 = vst [vmem:[%s2735_s21 + $0x1d0] sm:$0xff] %v1746_v26  ;;  %1749 = vst [vmem:[%s2735_s21 + $0x1d8] sm:$0xff] %v1748_v27  ;;  %v1752_v14 = vld [vmem:[%s2739_s29 + $0x1e8] sm:$0xff]  ;;  %v1754_v29 = vld [vmem:[%s2739_s29 + $0x1f0] sm:$0xff]  ;;  %s3806_s29 = smov %s3683_s23 }
 0x2d5   : >> { %1751 = vst [vmem:[%s2735_s21 + $0x1e0] sm:$0xff] %v1750_v28  ;;  %1753 = vst [vmem:[%s2735_s21 + $0x1e8] sm:$0xff] %v1752_v14 }
 0x2d6   : >> { %1755 = vst [vmem:[%s2735_s21 + $0x1f0] sm:$0xff] %v1754_v29  ;;  %s3805_s21 = smov %s3686_s24 }
 0x2d7 PF: > { %2675 = sdivrem.u32 %s3812_s9, 63 }
 0x2d8   : > { %s1965_s28 = smul.u32 504, %s3610_s26 }
 0x2da   : > { %s1767_s30 = scalar_lea.vmem %s3374_s18, %s1965_s28 [#allocation2]   ;;  %s1769_s27 = scalar_lea.vmem %s3604_s13, %s1965_s28  }
 0x2e0   : > { %s2676_s6 = spop.drf %2675 }
 0x2e1   : > { %p1967_p13 = scmp.le.s32.totalorder %s2676_s6, 0 }
 0x2e2   : > { %s2749_s7 = smov (!%p1967_p13), %s1769_s27   ;;  %s2753_s8 = smov (!%p1967_p13), %s1767_s30  }
 0x2e3   : > { %1860 = sbr.rel (%p1967_p13) target bundleno = 752 (0x2f0), region = 135  ;;  %s2757_s10 = smov (!%p1967_p13), 0  }
 0x2e4   : > { %s2761_s11 = smov (!%p1967_p13), 0  }
 0x2e8 LB: >> { %v1779_v30 = vld [vmem:[%s2755_s8] sm:$0xff]  ;;  %s1781_s12 = sadd.s32 1, %s2759_s10  ;;  %s1773_s11 = sadd.s32 1, %s2763_s11   ;;  %s2763_s11 = sphi %s2761_s11, %s1773_s11   ;;  %s2759_s10 = sphi %s2757_s10, %s2758_s10   ;;  %s2755_s8 = sphi %s2753_s8, %s1786_s8   ;;  %s2751_s7 = sphi %s2749_s7, %s1787_s7  }
 0x2e9   : >> { %1780 = vst [vmem:[%s2751_s7] sm:$0xff] %v1779_v30  ;;  %p1782_p0 = scmp.ge.s32.totalorder %s1781_s12, %s2676_s6  ;;  %p1772_p1 = scmp.ge.s32.totalorder %s1773_s11, %s2676_s6 }
 0x2eb   : >> { %s3816_s12 = smov (%p1782_p0, %s1781_s12), 0  ;;  %1775 = sbr.rel (!%p1772_p1) target bundleno = 744 (0x2e8), region = 141 }
 0x2ec   : >> { %s1968_s18 = sshll.u32 %s3816_s12, 3  ;;  %s2758_s10 = smov %s3816_s12  }
 0x2ed   : >> { %s1786_s8 = scalar_lea.vmem %s1767_s30, %s1968_s18 [#allocation2]   ;;  %s1787_s7 = scalar_lea.vmem %s1769_s27, %s1968_s18  }
 0x2f0 PF: > { %p12_p2 = scmp.ge.s32.totalorder %s2812_s22, 4   ;;  %s3808_s18 = smov %s2727_s19 }
 0x2f1   : > { %s3809_s19 = smov %s2820_s25  ;;  %s3810_s20 = smov %s2812_s22 }
 0x2f2   :  { %14 = sbr.rel (!%p12_p2) target bundleno = 2 (0x2), region = 152 }

</bundles_post_ra>
